<compile_context>
chip_gen: v7x
topology: tpu7x:2x2x1
jax: 0.10.0
libtpu: 0.0.40
codegen_flags: <defaults>
</compile_context>

<pallas_src>
import jax
import jax.numpy as jnp
from jax.experimental import pallas as pl
from jax.experimental.pallas import tpu as pltpu

INPUT_SIZE = 28
HIDDEN = 64
NUM_CLASSES = 10


# --------------------------- Pallas kernel -----------------------------------

def fused_rnn_kernel(x_ref, wih0_ref, whh0_ref, b0_ref, w1_ref, b1_ref,
                     wout_ref, bout_ref, out_ref, xp_s):
    """2-layer LSTM over T steps + Linear head, fully fused in one invocation.

    x_ref   : (B, T, D)  f32   raw batch-first input (projection done in-kernel)
    wih0_ref: (D, 4H)    bf16  layer-0 input weights   (transposed, [i,f,o,g], i/f/o *0.5)
    whh0_ref: (H, 4H)    bf16  layer-0 recurrent wts   (transposed, [i,f,o,g], i/f/o *0.5)
    b0_ref  : (1, 4H)    f32   combined layer-0 bias   ([i,f,o,g], i/f/o *0.5)
    w1_ref  : (2H, 4H)   bf16  fused layer-1 weights [W_ih1^T ; W_hh1^T] (same treatment)
    b1_ref  : (1, 4H)    f32   combined layer-1 bias
    wout_ref: (H, C) bf16, bout_ref: (1, C) f32 — Linear head
    out_ref : (B, C)     f32
    xp_s    : (T, B, 4H) f32   VMEM scratch holding the layer-0 input projection
    """
    B, T, D = x_ref.shape
    H = whh0_ref.shape[0]
    G = 4 * H

    wih0 = wih0_ref[...]
    whh0 = whh0_ref[...]
    w1 = w1_ref[...]

    # Hoist bias broadcasts out of the time loop (JAX does not CSE broadcast_in_dim).
    b0_t = jnp.broadcast_to(b0_ref[...], (T, G))
    b1_b = jnp.broadcast_to(b1_ref[...], (B, G))

    # ---- Layer-0 input projection, computed once up front, off the serial recurrence.
    # B is tiny & static: one (T, D) @ (D, 4H) matmul per batch row, scattered into the
    # time-major scratch so the recurrence can read xp_s[t] with a single leading-index
    # load per step.
    for b in range(B):
        xp_s[:, b, :] = (
            jnp.dot(x_ref[b].astype(jnp.bfloat16), wih0,
                    preferred_element_type=jnp.float32) + b0_t)

    def cell(gates, c):
        # i/f/o pre-activations were pre-scaled by 0.5, so a single full-width tanh
        # yields sigmoid(z) = 0.5 * tanh(z/2) + 0.5 via a cheap VPU affine.
        t_all = jnp.tanh(gates)
        sig = 0.5 * t_all[:, :3 * H] + 0.5
        i_g = sig[:, :H]
        f_g = sig[:, H:2 * H]
        o_g = sig[:, 2 * H:]
        g_g = t_all[:, 3 * H:]
        c_new = f_g * c + i_g * g_g
        h_new = o_g * jnp.tanh(c_new)
        # h only ever feeds matmuls -> carry it in bf16; cell state c stays f32.
        return h_new.astype(jnp.bfloat16), c_new

    def step(t, carry):
        h0, c0, h1, c1 = carry
        # Layer 0: input projection already in scratch; only the recurrent matmul left.
        g0 = xp_s[t] + jnp.dot(h0, whh0, preferred_element_type=jnp.float32)
        h0, c0 = cell(g0, c0)
        # Layer 1: single fused (B, 2H) @ (2H, 4H) matmul on the concatenated hiddens.
        h01 = jnp.concatenate([h0, h1], axis=1)
        g1 = jnp.dot(h01, w1, preferred_element_type=jnp.float32) + b1_b
        h1, c1 = cell(g1, c1)
        return h0, c0, h1, c1

    zh = jnp.zeros((B, H), jnp.bfloat16)
    zc = jnp.zeros((B, H), jnp.float32)
    _, _, h1_last, _ = jax.lax.fori_loop(0, T, step, (zh, zc, zh, zc), unroll=True)

    # Linear head on the last step only (== r_out[:, -1, :] in the PyTorch module).
    out_ref[...] = (jnp.dot(h1_last, wout_ref[...], preferred_element_type=jnp.float32)
                    + bout_ref[...]).astype(out_ref.dtype)


def _fused_lstm_head(x, prep):
    """Single grid-less pallas_call; every operand is a full-array VMEM block."""
    B, T, D = x.shape
    H, C, G = HIDDEN, NUM_CLASSES, 4 * HIDDEN

    flops = (2 * B * T * D * G                                # input projection
             + T * (2 * B * H * G + 2 * B * 2 * H * G)        # recurrence (both layers)
             + 2 * B * H * C)                                 # head
    transcendentals = T * 2 * (B * G + B * H)                 # gate tanh + cell tanh
    bytes_accessed = (x.size * 4
                      + 2 * (D * G + H * G + 2 * H * G + H * C)   # bf16 weights
                      + 4 * (2 * G + C)                           # f32 biases
                      + B * C * 4)                                # output

    vmem_spec = pl.BlockSpec(memory_space=pltpu.MemorySpace.VMEM)
    return pl.pallas_call(
        fused_rnn_kernel,
        out_shape=jax.ShapeDtypeStruct((B, C), jnp.float32),
        in_specs=[vmem_spec] * 8,
        out_specs=vmem_spec,
        scratch_shapes=[pltpu.VMEM((T, B, G), jnp.float32)],
        cost_estimate=pl.CostEstimate(flops=flops,
                                      transcendentals=transcendentals,
                                      bytes_accessed=bytes_accessed),
    )(x, prep["wih0"], prep["whh0"], prep["b0"],
      prep["w1"], prep["b1"], prep["wout"], prep["bout"])


# --------------------------- Parameters --------------------------------------

def init_params(key):
    """PyTorch default LSTM/Linear init: U(-1/sqrt(H), 1/sqrt(H)); PyTorch layout."""
    bound = 1.0 / (HIDDEN ** 0.5)
    keys = jax.random.split(key, 10)

    def u(k_, shape):
        return jax.random.uniform(k_, shape, jnp.float32, -bound, bound)

    return {
        "w_ih_l0": u(keys[0], (4 * HIDDEN, INPUT_SIZE)),
        "w_hh_l0": u(keys[1], (4 * HIDDEN, HIDDEN)),
        "b_ih_l0": u(keys[2], (4 * HIDDEN,)),
        "b_hh_l0": u(keys[3], (4 * HIDDEN,)),
        "w_ih_l1": u(keys[4], (4 * HIDDEN, HIDDEN)),
        "w_hh_l1": u(keys[5], (4 * HIDDEN, HIDDEN)),
        "b_ih_l1": u(keys[6], (4 * HIDDEN,)),
        "b_hh_l1": u(keys[7], (4 * HIDDEN,)),
        "w_out":   u(keys[8], (NUM_CLASSES, HIDDEN)),
        "b_out":   u(keys[9], (NUM_CLASSES,)),
    }


def prepare_params(p):
    """One-time prep (outside the per-call path):
       * transpose weights to (K, 4H) layout, fuse layer-1's two weights along K,
       * combine b_ih + b_hh,
       * reorder gate columns [i, f, g, o] -> [i, f, o, g],
       * pre-scale the sigmoid gates (i, f, o) by 0.5 so the kernel uses one full-width
         tanh per gate block (sigmoid(z) = 0.5*tanh(z/2) + 0.5),
       * cast matmul operands (weights) to bf16; biases stay f32."""

    def reorder_prescale(a):  # last axis is 4H in PyTorch order [i, f, g, o]
        i, f, g, o = jnp.split(a, 4, axis=-1)
        return jnp.concatenate([0.5 * i, 0.5 * f, 0.5 * o, g], axis=-1)

    w1 = jnp.concatenate([p["w_ih_l1"].T, p["w_hh_l1"].T], axis=0)        # (2H, 4H)
    return {
        "wih0": reorder_prescale(p["w_ih_l0"].T).astype(jnp.bfloat16),    # (D, 4H)
        "whh0": reorder_prescale(p["w_hh_l0"].T).astype(jnp.bfloat16),    # (H, 4H)
        "b0":   reorder_prescale((p["b_ih_l0"] + p["b_hh_l0"]).reshape(1, -1)),  # (1,4H) f32
        "w1":   reorder_prescale(w1).astype(jnp.bfloat16),                # (2H, 4H)
        "b1":   reorder_prescale((p["b_ih_l1"] + p["b_hh_l1"]).reshape(1, -1)),  # (1,4H) f32
        "wout": p["w_out"].T.astype(jnp.bfloat16),                        # (H, C)
        "bout": p["b_out"].reshape(1, -1).astype(jnp.float32),            # (1, C)
    }


# ----------------------------- Forward ----------------------------------------

@jax.jit
def rnn_forward(x_btd, prep):
    """x_btd: (B, T, 28), batch_first like the PyTorch module. One fused kernel call."""
    return _fused_lstm_head(x_btd.astype(jnp.float32), prep)


# Pure-JAX reference (semantics check vs. the Pallas path), PyTorch gate order, all f32.
def rnn_forward_ref(x_btd, params):
    def layer(xs, w_ih, w_hh, b):
        B = xs.shape[1]
        H = w_hh.shape[1]

        def step(carry, x_t):
            h, c = carry
            gates = x_t @ w_ih.T + h @ w_hh.T + b
            i, f, g, o = jnp.split(gates, 4, axis=-1)
            c = jax.nn.sigmoid(f) * c + jax.nn.sigmoid(i) * jnp.tanh(g)
            h = jax.nn.sigmoid(o) * jnp.tanh(c)
            return (h, c), h

        init = (jnp.zeros((B, H), jnp.float32), jnp.zeros((B, H), jnp.float32))
        _, hs = jax.lax.scan(step, init, xs)
        return hs

    xs = jnp.transpose(x_btd, (1, 0, 2))
    h0 = layer(xs, params["w_ih_l0"], params["w_hh_l0"],
               params["b_ih_l0"] + params["b_hh_l0"])
    h1 = layer(h0, params["w_ih_l1"], params["w_hh_l1"],
               params["b_ih_l1"] + params["b_hh_l1"])
    return h1[-1] @ params["w_out"].T + params["b_out"]


if __name__ == "__main__":
    key = jax.random.PRNGKey(0)
    pkey, xkey = jax.random.split(key)
    params = init_params(pkey)
    prep = prepare_params(params)     # one-time transpose / reorder / prescale / bf16 cast

    B, T = 2, 8
    x = jax.random.normal(xkey, (B, T, INPUT_SIZE), jnp.float32)

    out = jax.block_until_ready(rnn_forward(x, prep))
    ref = rnn_forward_ref(x, params)

    assert out.shape == (B, NUM_CLASSES)
    assert bool(jnp.all(jnp.isfinite(out)))
    # Tolerance absorbs the bf16 matmul-operand path (kept per review guidance).
    assert bool(jnp.allclose(out, ref, atol=2e-2, rtol=2e-2)), (out, ref)
    print("KERNEL_OK")
</pallas_src>

<mosaic_0001>
module attributes {stable_mosaic.version = 11 : i64} {
  func.func @fused_rnn_kernel(%arg0: memref<2x8x28xf32, #tpu.memory_space<vmem>>, %arg1: memref<28x256xbf16, #tpu.memory_space<vmem>>, %arg2: memref<64x256xbf16, #tpu.memory_space<vmem>>, %arg3: memref<1x256xf32, #tpu.memory_space<vmem>>, %arg4: memref<128x256xbf16, #tpu.memory_space<vmem>>, %arg5: memref<1x256xf32, #tpu.memory_space<vmem>>, %arg6: memref<64x10xbf16, #tpu.memory_space<vmem>>, %arg7: memref<1x10xf32, #tpu.memory_space<vmem>>, %arg8: memref<2x10xf32, #tpu.memory_space<vmem>>, %arg9: memref<8x2x256xf32, #tpu.memory_space<vmem>>) attributes {dimension_semantics = [], scalar_prefetch = 0 : i64, scratch_operands = 1 : i64, tpu.core_type = #tpu.core_type<tc>} {
    %c0 = arith.constant 0 : index
    %c0_0 = arith.constant 0 : index
    %0 = vector.load %arg1[%c0, %c0_0] : memref<28x256xbf16, #tpu.memory_space<vmem>>, vector<28x256xbf16>
    %c0_1 = arith.constant 0 : index
    %c0_2 = arith.constant 0 : index
    %1 = vector.load %arg2[%c0_1, %c0_2] : memref<64x256xbf16, #tpu.memory_space<vmem>>, vector<64x256xbf16>
    %c0_3 = arith.constant 0 : index
    %c0_4 = arith.constant 0 : index
    %2 = vector.load %arg4[%c0_3, %c0_4] : memref<128x256xbf16, #tpu.memory_space<vmem>>, vector<128x256xbf16>
    %c0_5 = arith.constant 0 : index
    %c0_6 = arith.constant 0 : index
    %3 = vector.load %arg3[%c0_5, %c0_6] : memref<1x256xf32, #tpu.memory_space<vmem>>, vector<1x256xf32>
    %4 = vector.shape_cast %3 : vector<1x256xf32> to vector<1x256xf32>
    %5 = vector.broadcast %4 : vector<1x256xf32> to vector<8x256xf32>
    %c0_7 = arith.constant 0 : index
    %c0_8 = arith.constant 0 : index
    %6 = vector.load %arg5[%c0_7, %c0_8] : memref<1x256xf32, #tpu.memory_space<vmem>>, vector<1x256xf32>
    %7 = vector.shape_cast %6 : vector<1x256xf32> to vector<1x256xf32>
    %8 = vector.broadcast %7 : vector<1x256xf32> to vector<2x256xf32>
    %c0_9 = arith.constant 0 : index
    %c0_10 = arith.constant 0 : index
    %c0_11 = arith.constant 0 : index
    %9 = vector.load %arg0[%c0_9, %c0_10, %c0_11] : memref<2x8x28xf32, #tpu.memory_space<vmem>>, vector<1x8x28xf32>
    %10 = vector.shape_cast %9 : vector<1x8x28xf32> to vector<8x28xf32>
    %11 = arith.truncf %10 : vector<8x28xf32> to vector<8x28xbf16>
    %cst = arith.constant dense<0.000000e+00> : vector<8x256xf32>
    %12 = tpu.matmul %11, %0, %cst {dimension_numbers = #tpu.dot_dimension_numbers<[1], [0], [0], [1], [0, 0, 1, 1], [], []>} : vector<8x28xbf16>, vector<28x256xbf16>, vector<8x256xf32> -> vector<8x256xf32>
    %13 = arith.addf %12, %5 : vector<8x256xf32>
    %c0_12 = arith.constant 0 : index
    %c0_13 = arith.constant 0 : index
    %c0_14 = arith.constant 0 : index
    %14 = vector.load %arg9[%c0_12, %c0_13, %c0_14] : memref<8x2x256xf32, #tpu.memory_space<vmem>>, vector<8x1x256xf32>
    %15 = vector.shape_cast %14 : vector<8x1x256xf32> to vector<8x256xf32>
    %16 = vector.shape_cast %13 : vector<8x256xf32> to vector<8x1x256xf32>
    tpu.vector_store %arg9[%c0_12, %c0_13, %c0_14], %16 {strides = array<i32>} : memref<8x2x256xf32, #tpu.memory_space<vmem>>, vector<8x1x256xf32>,
    %c1 = arith.constant 1 : index
    %c0_15 = arith.constant 0 : index
    %c0_16 = arith.constant 0 : index
    %17 = vector.load %arg0[%c1, %c0_15, %c0_16] : memref<2x8x28xf32, #tpu.memory_space<vmem>>, vector<1x8x28xf32>
    %18 = vector.shape_cast %17 : vector<1x8x28xf32> to vector<8x28xf32>
    %19 = arith.truncf %18 : vector<8x28xf32> to vector<8x28xbf16>
    %cst_17 = arith.constant dense<0.000000e+00> : vector<8x256xf32>
    %20 = tpu.matmul %19, %0, %cst_17 {dimension_numbers = #tpu.dot_dimension_numbers<[1], [0], [0], [1], [0, 0, 1, 1], [], []>} : vector<8x28xbf16>, vector<28x256xbf16>, vector<8x256xf32> -> vector<8x256xf32>
    %21 = arith.addf %20, %5 : vector<8x256xf32>
    %c0_18 = arith.constant 0 : index
    %c1_19 = arith.constant 1 : index
    %c0_20 = arith.constant 0 : index
    %22 = vector.load %arg9[%c0_18, %c1_19, %c0_20] : memref<8x2x256xf32, #tpu.memory_space<vmem>>, vector<8x1x256xf32>
    %23 = vector.shape_cast %22 : vector<8x1x256xf32> to vector<8x256xf32>
    %24 = vector.shape_cast %21 : vector<8x256xf32> to vector<8x1x256xf32>
    tpu.vector_store %arg9[%c0_18, %c1_19, %c0_20], %24 {strides = array<i32>} : memref<8x2x256xf32, #tpu.memory_space<vmem>>, vector<8x1x256xf32>,
    %cst_21 = arith.constant 0.000000e+00 : bf16
    %25 = vector.broadcast %cst_21 : bf16 to vector<2x64xbf16>
    %cst_22 = arith.constant 0.000000e+00 : f32
    %26 = vector.broadcast %cst_22 : f32 to vector<2x64xf32>
    %c0_i32 = arith.constant 0 : i32
    %27 = arith.index_cast %c0_i32 : i32 to index
    %c0_23 = arith.constant 0 : index
    %c0_24 = arith.constant 0 : index
    %28 = vector.load %arg9[%27, %c0_23, %c0_24] : memref<8x2x256xf32, #tpu.memory_space<vmem>>, vector<1x2x256xf32>
    %29 = vector.shape_cast %28 : vector<1x2x256xf32> to vector<2x256xf32>
    %cst_25 = arith.constant dense<0.000000e+00> : vector<2x256xf32>
    %30 = tpu.matmul %25, %1, %cst_25 {dimension_numbers = #tpu.dot_dimension_numbers<[1], [0], [0], [1], [0, 0, 1, 1], [], []>} : vector<2x64xbf16>, vector<64x256xbf16>, vector<2x256xf32> -> vector<2x256xf32>
    %31 = arith.addf %29, %30 : vector<2x256xf32>
    %32 = math.tanh %31 : vector<2x256xf32>
    %33 = vector.extract_strided_slice %32 {offsets = [0, 0], sizes = [2, 192], strides = [1, 1]} : vector<2x256xf32> to vector<2x192xf32>
    %cst_26 = arith.constant 5.000000e-01 : f32
    %34 = vector.broadcast %cst_26 : f32 to vector<2x192xf32>
    %35 = arith.mulf %34, %33 : vector<2x192xf32>
    %cst_27 = arith.constant 5.000000e-01 : f32
    %36 = vector.broadcast %cst_27 : f32 to vector<2x192xf32>
    %37 = arith.addf %35, %36 : vector<2x192xf32>
    %38 = vector.extract_strided_slice %37 {offsets = [0, 0], sizes = [2, 64], strides = [1, 1]} : vector<2x192xf32> to vector<2x64xf32>
    %39 = vector.extract_strided_slice %37 {offsets = [0, 64], sizes = [2, 64], strides = [1, 1]} : vector<2x192xf32> to vector<2x64xf32>
    %40 = vector.extract_strided_slice %37 {offsets = [0, 128], sizes = [2, 64], strides = [1, 1]} : vector<2x192xf32> to vector<2x64xf32>
    %41 = vector.extract_strided_slice %32 {offsets = [0, 192], sizes = [2, 64], strides = [1, 1]} : vector<2x256xf32> to vector<2x64xf32>
    %42 = arith.mulf %39, %26 : vector<2x64xf32>
    %43 = arith.mulf %38, %41 : vector<2x64xf32>
    %44 = arith.addf %42, %43 : vector<2x64xf32>
    %45 = math.tanh %44 : vector<2x64xf32>
    %46 = arith.mulf %40, %45 : vector<2x64xf32>
    %47 = arith.truncf %46 : vector<2x64xf32> to vector<2x64xbf16>
    %48 = tpu.concatenate %47, %25 in 1 : vector<2x64xbf16>, vector<2x64xbf16> -> vector<2x128xbf16>
    %cst_28 = arith.constant dense<0.000000e+00> : vector<2x256xf32>
    %49 = tpu.matmul %48, %2, %cst_28 {dimension_numbers = #tpu.dot_dimension_numbers<[1], [0], [0], [1], [0, 0, 1, 1], [], []>} : vector<2x128xbf16>, vector<128x256xbf16>, vector<2x256xf32> -> vector<2x256xf32>
    %50 = arith.addf %49, %8 : vector<2x256xf32>
    %51 = math.tanh %50 : vector<2x256xf32>
    %52 = vector.extract_strided_slice %51 {offsets = [0, 0], sizes = [2, 192], strides = [1, 1]} : vector<2x256xf32> to vector<2x192xf32>
    %cst_29 = arith.constant 5.000000e-01 : f32
    %53 = vector.broadcast %cst_29 : f32 to vector<2x192xf32>
    %54 = arith.mulf %53, %52 : vector<2x192xf32>
    %cst_30 = arith.constant 5.000000e-01 : f32
    %55 = vector.broadcast %cst_30 : f32 to vector<2x192xf32>
    %56 = arith.addf %54, %55 : vector<2x192xf32>
    %57 = vector.extract_strided_slice %56 {offsets = [0, 0], sizes = [2, 64], strides = [1, 1]} : vector<2x192xf32> to vector<2x64xf32>
    %58 = vector.extract_strided_slice %56 {offsets = [0, 64], sizes = [2, 64], strides = [1, 1]} : vector<2x192xf32> to vector<2x64xf32>
    %59 = vector.extract_strided_slice %56 {offsets = [0, 128], sizes = [2, 64], strides = [1, 1]} : vector<2x192xf32> to vector<2x64xf32>
    %60 = vector.extract_strided_slice %51 {offsets = [0, 192], sizes = [2, 64], strides = [1, 1]} : vector<2x256xf32> to vector<2x64xf32>
    %61 = arith.mulf %58, %26 : vector<2x64xf32>
    %62 = arith.mulf %57, %60 : vector<2x64xf32>
    %63 = arith.addf %61, %62 : vector<2x64xf32>
    %64 = math.tanh %63 : vector<2x64xf32>
    %65 = arith.mulf %59, %64 : vector<2x64xf32>
    %66 = arith.truncf %65 : vector<2x64xf32> to vector<2x64xbf16>
    %c1_i32 = arith.constant 1 : i32
    %67 = arith.index_cast %c1_i32 : i32 to index
    %c0_31 = arith.constant 0 : index
    %c0_32 = arith.constant 0 : index
    %68 = vector.load %arg9[%67, %c0_31, %c0_32] : memref<8x2x256xf32, #tpu.memory_space<vmem>>, vector<1x2x256xf32>
    %69 = vector.shape_cast %68 : vector<1x2x256xf32> to vector<2x256xf32>
    %cst_33 = arith.constant dense<0.000000e+00> : vector<2x256xf32>
    %70 = tpu.matmul %47, %1, %cst_33 {dimension_numbers = #tpu.dot_dimension_numbers<[1], [0], [0], [1], [0, 0, 1, 1], [], []>} : vector<2x64xbf16>, vector<64x256xbf16>, vector<2x256xf32> -> vector<2x256xf32>
    %71 = arith.addf %69, %70 : vector<2x256xf32>
    %72 = math.tanh %71 : vector<2x256xf32>
    %73 = vector.extract_strided_slice %72 {offsets = [0, 0], sizes = [2, 192], strides = [1, 1]} : vector<2x256xf32> to vector<2x192xf32>
    %cst_34 = arith.constant 5.000000e-01 : f32
    %74 = vector.broadcast %cst_34 : f32 to vector<2x192xf32>
    %75 = arith.mulf %74, %73 : vector<2x192xf32>
    %cst_35 = arith.constant 5.000000e-01 : f32
    %76 = vector.broadcast %cst_35 : f32 to vector<2x192xf32>
    %77 = arith.addf %75, %76 : vector<2x192xf32>
    %78 = vector.extract_strided_slice %77 {offsets = [0, 0], sizes = [2, 64], strides = [1, 1]} : vector<2x192xf32> to vector<2x64xf32>
    %79 = vector.extract_strided_slice %77 {offsets = [0, 64], sizes = [2, 64], strides = [1, 1]} : vector<2x192xf32> to vector<2x64xf32>
    %80 = vector.extract_strided_slice %77 {offsets = [0, 128], sizes = [2, 64], strides = [1, 1]} : vector<2x192xf32> to vector<2x64xf32>
    %81 = vector.extract_strided_slice %72 {offsets = [0, 192], sizes = [2, 64], strides = [1, 1]} : vector<2x256xf32> to vector<2x64xf32>
    %82 = arith.mulf %79, %44 : vector<2x64xf32>
    %83 = arith.mulf %78, %81 : vector<2x64xf32>
    %84 = arith.addf %82, %83 : vector<2x64xf32>
    %85 = math.tanh %84 : vector<2x64xf32>
    %86 = arith.mulf %80, %85 : vector<2x64xf32>
    %87 = arith.truncf %86 : vector<2x64xf32> to vector<2x64xbf16>
    %88 = tpu.concatenate %87, %66 in 1 : vector<2x64xbf16>, vector<2x64xbf16> -> vector<2x128xbf16>
    %cst_36 = arith.constant dense<0.000000e+00> : vector<2x256xf32>
    %89 = tpu.matmul %88, %2, %cst_36 {dimension_numbers = #tpu.dot_dimension_numbers<[1], [0], [0], [1], [0, 0, 1, 1], [], []>} : vector<2x128xbf16>, vector<128x256xbf16>, vector<2x256xf32> -> vector<2x256xf32>
    %90 = arith.addf %89, %8 : vector<2x256xf32>
    %91 = math.tanh %90 : vector<2x256xf32>
    %92 = vector.extract_strided_slice %91 {offsets = [0, 0], sizes = [2, 192], strides = [1, 1]} : vector<2x256xf32> to vector<2x192xf32>
    %cst_37 = arith.constant 5.000000e-01 : f32
    %93 = vector.broadcast %cst_37 : f32 to vector<2x192xf32>
    %94 = arith.mulf %93, %92 : vector<2x192xf32>
    %cst_38 = arith.constant 5.000000e-01 : f32
    %95 = vector.broadcast %cst_38 : f32 to vector<2x192xf32>
    %96 = arith.addf %94, %95 : vector<2x192xf32>
    %97 = vector.extract_strided_slice %96 {offsets = [0, 0], sizes = [2, 64], strides = [1, 1]} : vector<2x192xf32> to vector<2x64xf32>
    %98 = vector.extract_strided_slice %96 {offsets = [0, 64], sizes = [2, 64], strides = [1, 1]} : vector<2x192xf32> to vector<2x64xf32>
    %99 = vector.extract_strided_slice %96 {offsets = [0, 128], sizes = [2, 64], strides = [1, 1]} : vector<2x192xf32> to vector<2x64xf32>
    %100 = vector.extract_strided_slice %91 {offsets = [0, 192], sizes = [2, 64], strides = [1, 1]} : vector<2x256xf32> to vector<2x64xf32>
    %101 = arith.mulf %98, %63 : vector<2x64xf32>
    %102 = arith.mulf %97, %100 : vector<2x64xf32>
    %103 = arith.addf %101, %102 : vector<2x64xf32>
    %104 = math.tanh %103 : vector<2x64xf32>
    %105 = arith.mulf %99, %104 : vector<2x64xf32>
    %106 = arith.truncf %105 : vector<2x64xf32> to vector<2x64xbf16>
    %c2_i32 = arith.constant 2 : i32
    %107 = arith.index_cast %c2_i32 : i32 to index
    %c0_39 = arith.constant 0 : index
    %c0_40 = arith.constant 0 : index
    %108 = vector.load %arg9[%107, %c0_39, %c0_40] : memref<8x2x256xf32, #tpu.memory_space<vmem>>, vector<1x2x256xf32>
    %109 = vector.shape_cast %108 : vector<1x2x256xf32> to vector<2x256xf32>
    %cst_41 = arith.constant dense<0.000000e+00> : vector<2x256xf32>
    %110 = tpu.matmul %87, %1, %cst_41 {dimension_numbers = #tpu.dot_dimension_numbers<[1], [0], [0], [1], [0, 0, 1, 1], [], []>} : vector<2x64xbf16>, vector<64x256xbf16>, vector<2x256xf32> -> vector<2x256xf32>
    %111 = arith.addf %109, %110 : vector<2x256xf32>
    %112 = math.tanh %111 : vector<2x256xf32>
    %113 = vector.extract_strided_slice %112 {offsets = [0, 0], sizes = [2, 192], strides = [1, 1]} : vector<2x256xf32> to vector<2x192xf32>
    %cst_42 = arith.constant 5.000000e-01 : f32
    %114 = vector.broadcast %cst_42 : f32 to vector<2x192xf32>
    %115 = arith.mulf %114, %113 : vector<2x192xf32>
    %cst_43 = arith.constant 5.000000e-01 : f32
    %116 = vector.broadcast %cst_43 : f32 to vector<2x192xf32>
    %117 = arith.addf %115, %116 : vector<2x192xf32>
    %118 = vector.extract_strided_slice %117 {offsets = [0, 0], sizes = [2, 64], strides = [1, 1]} : vector<2x192xf32> to vector<2x64xf32>
    %119 = vector.extract_strided_slice %117 {offsets = [0, 64], sizes = [2, 64], strides = [1, 1]} : vector<2x192xf32> to vector<2x64xf32>
    %120 = vector.extract_strided_slice %117 {offsets = [0, 128], sizes = [2, 64], strides = [1, 1]} : vector<2x192xf32> to vector<2x64xf32>
    %121 = vector.extract_strided_slice %112 {offsets = [0, 192], sizes = [2, 64], strides = [1, 1]} : vector<2x256xf32> to vector<2x64xf32>
    %122 = arith.mulf %119, %84 : vector<2x64xf32>
    %123 = arith.mulf %118, %121 : vector<2x64xf32>
    %124 = arith.addf %122, %123 : vector<2x64xf32>
    %125 = math.tanh %124 : vector<2x64xf32>
    %126 = arith.mulf %120, %125 : vector<2x64xf32>
    %127 = arith.truncf %126 : vector<2x64xf32> to vector<2x64xbf16>
    %128 = tpu.concatenate %127, %106 in 1 : vector<2x64xbf16>, vector<2x64xbf16> -> vector<2x128xbf16>
    %cst_44 = arith.constant dense<0.000000e+00> : vector<2x256xf32>
    %129 = tpu.matmul %128, %2, %cst_44 {dimension_numbers = #tpu.dot_dimension_numbers<[1], [0], [0], [1], [0, 0, 1, 1], [], []>} : vector<2x128xbf16>, vector<128x256xbf16>, vector<2x256xf32> -> vector<2x256xf32>
    %130 = arith.addf %129, %8 : vector<2x256xf32>
    %131 = math.tanh %130 : vector<2x256xf32>
    %132 = vector.extract_strided_slice %131 {offsets = [0, 0], sizes = [2, 192], strides = [1, 1]} : vector<2x256xf32> to vector<2x192xf32>
    %cst_45 = arith.constant 5.000000e-01 : f32
    %133 = vector.broadcast %cst_45 : f32 to vector<2x192xf32>
    %134 = arith.mulf %133, %132 : vector<2x192xf32>
    %cst_46 = arith.constant 5.000000e-01 : f32
    %135 = vector.broadcast %cst_46 : f32 to vector<2x192xf32>
    %136 = arith.addf %134, %135 : vector<2x192xf32>
    %137 = vector.extract_strided_slice %136 {offsets = [0, 0], sizes = [2, 64], strides = [1, 1]} : vector<2x192xf32> to vector<2x64xf32>
    %138 = vector.extract_strided_slice %136 {offsets = [0, 64], sizes = [2, 64], strides = [1, 1]} : vector<2x192xf32> to vector<2x64xf32>
    %139 = vector.extract_strided_slice %136 {offsets = [0, 128], sizes = [2, 64], strides = [1, 1]} : vector<2x192xf32> to vector<2x64xf32>
    %140 = vector.extract_strided_slice %131 {offsets = [0, 192], sizes = [2, 64], strides = [1, 1]} : vector<2x256xf32> to vector<2x64xf32>
    %141 = arith.mulf %138, %103 : vector<2x64xf32>
    %142 = arith.mulf %137, %140 : vector<2x64xf32>
    %143 = arith.addf %141, %142 : vector<2x64xf32>
    %144 = math.tanh %143 : vector<2x64xf32>
    %145 = arith.mulf %139, %144 : vector<2x64xf32>
    %146 = arith.truncf %145 : vector<2x64xf32> to vector<2x64xbf16>
    %c3_i32 = arith.constant 3 : i32
    %147 = arith.index_cast %c3_i32 : i32 to index
    %c0_47 = arith.constant 0 : index
    %c0_48 = arith.constant 0 : index
    %148 = vector.load %arg9[%147, %c0_47, %c0_48] : memref<8x2x256xf32, #tpu.memory_space<vmem>>, vector<1x2x256xf32>
    %149 = vector.shape_cast %148 : vector<1x2x256xf32> to vector<2x256xf32>
    %cst_49 = arith.constant dense<0.000000e+00> : vector<2x256xf32>
    %150 = tpu.matmul %127, %1, %cst_49 {dimension_numbers = #tpu.dot_dimension_numbers<[1], [0], [0], [1], [0, 0, 1, 1], [], []>} : vector<2x64xbf16>, vector<64x256xbf16>, vector<2x256xf32> -> vector<2x256xf32>
    %151 = arith.addf %149, %150 : vector<2x256xf32>
    %152 = math.tanh %151 : vector<2x256xf32>
    %153 = vector.extract_strided_slice %152 {offsets = [0, 0], sizes = [2, 192], strides = [1, 1]} : vector<2x256xf32> to vector<2x192xf32>
    %cst_50 = arith.constant 5.000000e-01 : f32
    %154 = vector.broadcast %cst_50 : f32 to vector<2x192xf32>
    %155 = arith.mulf %154, %153 : vector<2x192xf32>
    %cst_51 = arith.constant 5.000000e-01 : f32
    %156 = vector.broadcast %cst_51 : f32 to vector<2x192xf32>
    %157 = arith.addf %155, %156 : vector<2x192xf32>
    %158 = vector.extract_strided_slice %157 {offsets = [0, 0], sizes = [2, 64], strides = [1, 1]} : vector<2x192xf32> to vector<2x64xf32>
    %159 = vector.extract_strided_slice %157 {offsets = [0, 64], sizes = [2, 64], strides = [1, 1]} : vector<2x192xf32> to vector<2x64xf32>
    %160 = vector.extract_strided_slice %157 {offsets = [0, 128], sizes = [2, 64], strides = [1, 1]} : vector<2x192xf32> to vector<2x64xf32>
    %161 = vector.extract_strided_slice %152 {offsets = [0, 192], sizes = [2, 64], strides = [1, 1]} : vector<2x256xf32> to vector<2x64xf32>
    %162 = arith.mulf %159, %124 : vector<2x64xf32>
    %163 = arith.mulf %158, %161 : vector<2x64xf32>
    %164 = arith.addf %162, %163 : vector<2x64xf32>
    %165 = math.tanh %164 : vector<2x64xf32>
    %166 = arith.mulf %160, %165 : vector<2x64xf32>
    %167 = arith.truncf %166 : vector<2x64xf32> to vector<2x64xbf16>
    %168 = tpu.concatenate %167, %146 in 1 : vector<2x64xbf16>, vector<2x64xbf16> -> vector<2x128xbf16>
    %cst_52 = arith.constant dense<0.000000e+00> : vector<2x256xf32>
    %169 = tpu.matmul %168, %2, %cst_52 {dimension_numbers = #tpu.dot_dimension_numbers<[1], [0], [0], [1], [0, 0, 1, 1], [], []>} : vector<2x128xbf16>, vector<128x256xbf16>, vector<2x256xf32> -> vector<2x256xf32>
    %170 = arith.addf %169, %8 : vector<2x256xf32>
    %171 = math.tanh %170 : vector<2x256xf32>
    %172 = vector.extract_strided_slice %171 {offsets = [0, 0], sizes = [2, 192], strides = [1, 1]} : vector<2x256xf32> to vector<2x192xf32>
    %cst_53 = arith.constant 5.000000e-01 : f32
    %173 = vector.broadcast %cst_53 : f32 to vector<2x192xf32>
    %174 = arith.mulf %173, %172 : vector<2x192xf32>
    %cst_54 = arith.constant 5.000000e-01 : f32
    %175 = vector.broadcast %cst_54 : f32 to vector<2x192xf32>
    %176 = arith.addf %174, %175 : vector<2x192xf32>
    %177 = vector.extract_strided_slice %176 {offsets = [0, 0], sizes = [2, 64], strides = [1, 1]} : vector<2x192xf32> to vector<2x64xf32>
    %178 = vector.extract_strided_slice %176 {offsets = [0, 64], sizes = [2, 64], strides = [1, 1]} : vector<2x192xf32> to vector<2x64xf32>
    %179 = vector.extract_strided_slice %176 {offsets = [0, 128], sizes = [2, 64], strides = [1, 1]} : vector<2x192xf32> to vector<2x64xf32>
    %180 = vector.extract_strided_slice %171 {offsets = [0, 192], sizes = [2, 64], strides = [1, 1]} : vector<2x256xf32> to vector<2x64xf32>
    %181 = arith.mulf %178, %143 : vector<2x64xf32>
    %182 = arith.mulf %177, %180 : vector<2x64xf32>
    %183 = arith.addf %181, %182 : vector<2x64xf32>
    %184 = math.tanh %183 : vector<2x64xf32>
    %185 = arith.mulf %179, %184 : vector<2x64xf32>
    %186 = arith.truncf %185 : vector<2x64xf32> to vector<2x64xbf16>
    %c4_i32 = arith.constant 4 : i32
    %187 = arith.index_cast %c4_i32 : i32 to index
    %c0_55 = arith.constant 0 : index
    %c0_56 = arith.constant 0 : index
    %188 = vector.load %arg9[%187, %c0_55, %c0_56] : memref<8x2x256xf32, #tpu.memory_space<vmem>>, vector<1x2x256xf32>
    %189 = vector.shape_cast %188 : vector<1x2x256xf32> to vector<2x256xf32>
    %cst_57 = arith.constant dense<0.000000e+00> : vector<2x256xf32>
    %190 = tpu.matmul %167, %1, %cst_57 {dimension_numbers = #tpu.dot_dimension_numbers<[1], [0], [0], [1], [0, 0, 1, 1], [], []>} : vector<2x64xbf16>, vector<64x256xbf16>, vector<2x256xf32> -> vector<2x256xf32>
    %191 = arith.addf %189, %190 : vector<2x256xf32>
    %192 = math.tanh %191 : vector<2x256xf32>
    %193 = vector.extract_strided_slice %192 {offsets = [0, 0], sizes = [2, 192], strides = [1, 1]} : vector<2x256xf32> to vector<2x192xf32>
    %cst_58 = arith.constant 5.000000e-01 : f32
    %194 = vector.broadcast %cst_58 : f32 to vector<2x192xf32>
    %195 = arith.mulf %194, %193 : vector<2x192xf32>
    %cst_59 = arith.constant 5.000000e-01 : f32
    %196 = vector.broadcast %cst_59 : f32 to vector<2x192xf32>
    %197 = arith.addf %195, %196 : vector<2x192xf32>
    %198 = vector.extract_strided_slice %197 {offsets = [0, 0], sizes = [2, 64], strides = [1, 1]} : vector<2x192xf32> to vector<2x64xf32>
    %199 = vector.extract_strided_slice %197 {offsets = [0, 64], sizes = [2, 64], strides = [1, 1]} : vector<2x192xf32> to vector<2x64xf32>
    %200 = vector.extract_strided_slice %197 {offsets = [0, 128], sizes = [2, 64], strides = [1, 1]} : vector<2x192xf32> to vector<2x64xf32>
    %201 = vector.extract_strided_slice %192 {offsets = [0, 192], sizes = [2, 64], strides = [1, 1]} : vector<2x256xf32> to vector<2x64xf32>
    %202 = arith.mulf %199, %164 : vector<2x64xf32>
    %203 = arith.mulf %198, %201 : vector<2x64xf32>
    %204 = arith.addf %202, %203 : vector<2x64xf32>
    %205 = math.tanh %204 : vector<2x64xf32>
    %206 = arith.mulf %200, %205 : vector<2x64xf32>
    %207 = arith.truncf %206 : vector<2x64xf32> to vector<2x64xbf16>
    %208 = tpu.concatenate %207, %186 in 1 : vector<2x64xbf16>, vector<2x64xbf16> -> vector<2x128xbf16>
    %cst_60 = arith.constant dense<0.000000e+00> : vector<2x256xf32>
    %209 = tpu.matmul %208, %2, %cst_60 {dimension_numbers = #tpu.dot_dimension_numbers<[1], [0], [0], [1], [0, 0, 1, 1], [], []>} : vector<2x128xbf16>, vector<128x256xbf16>, vector<2x256xf32> -> vector<2x256xf32>
    %210 = arith.addf %209, %8 : vector<2x256xf32>
    %211 = math.tanh %210 : vector<2x256xf32>
    %212 = vector.extract_strided_slice %211 {offsets = [0, 0], sizes = [2, 192], strides = [1, 1]} : vector<2x256xf32> to vector<2x192xf32>
    %cst_61 = arith.constant 5.000000e-01 : f32
    %213 = vector.broadcast %cst_61 : f32 to vector<2x192xf32>
    %214 = arith.mulf %213, %212 : vector<2x192xf32>
    %cst_62 = arith.constant 5.000000e-01 : f32
    %215 = vector.broadcast %cst_62 : f32 to vector<2x192xf32>
    %216 = arith.addf %214, %215 : vector<2x192xf32>
    %217 = vector.extract_strided_slice %216 {offsets = [0, 0], sizes = [2, 64], strides = [1, 1]} : vector<2x192xf32> to vector<2x64xf32>
    %218 = vector.extract_strided_slice %216 {offsets = [0, 64], sizes = [2, 64], strides = [1, 1]} : vector<2x192xf32> to vector<2x64xf32>
    %219 = vector.extract_strided_slice %216 {offsets = [0, 128], sizes = [2, 64], strides = [1, 1]} : vector<2x192xf32> to vector<2x64xf32>
    %220 = vector.extract_strided_slice %211 {offsets = [0, 192], sizes = [2, 64], strides = [1, 1]} : vector<2x256xf32> to vector<2x64xf32>
    %221 = arith.mulf %218, %183 : vector<2x64xf32>
    %222 = arith.mulf %217, %220 : vector<2x64xf32>
    %223 = arith.addf %221, %222 : vector<2x64xf32>
    %224 = math.tanh %223 : vector<2x64xf32>
    %225 = arith.mulf %219, %224 : vector<2x64xf32>
    %226 = arith.truncf %225 : vector<2x64xf32> to vector<2x64xbf16>
    %c5_i32 = arith.constant 5 : i32
    %227 = arith.index_cast %c5_i32 : i32 to index
    %c0_63 = arith.constant 0 : index
    %c0_64 = arith.constant 0 : index
    %228 = vector.load %arg9[%227, %c0_63, %c0_64] : memref<8x2x256xf32, #tpu.memory_space<vmem>>, vector<1x2x256xf32>
    %229 = vector.shape_cast %228 : vector<1x2x256xf32> to vector<2x256xf32>
    %cst_65 = arith.constant dense<0.000000e+00> : vector<2x256xf32>
    %230 = tpu.matmul %207, %1, %cst_65 {dimension_numbers = #tpu.dot_dimension_numbers<[1], [0], [0], [1], [0, 0, 1, 1], [], []>} : vector<2x64xbf16>, vector<64x256xbf16>, vector<2x256xf32> -> vector<2x256xf32>
    %231 = arith.addf %229, %230 : vector<2x256xf32>
    %232 = math.tanh %231 : vector<2x256xf32>
    %233 = vector.extract_strided_slice %232 {offsets = [0, 0], sizes = [2, 192], strides = [1, 1]} : vector<2x256xf32> to vector<2x192xf32>
    %cst_66 = arith.constant 5.000000e-01 : f32
    %234 = vector.broadcast %cst_66 : f32 to vector<2x192xf32>
    %235 = arith.mulf %234, %233 : vector<2x192xf32>
    %cst_67 = arith.constant 5.000000e-01 : f32
    %236 = vector.broadcast %cst_67 : f32 to vector<2x192xf32>
    %237 = arith.addf %235, %236 : vector<2x192xf32>
    %238 = vector.extract_strided_slice %237 {offsets = [0, 0], sizes = [2, 64], strides = [1, 1]} : vector<2x192xf32> to vector<2x64xf32>
    %239 = vector.extract_strided_slice %237 {offsets = [0, 64], sizes = [2, 64], strides = [1, 1]} : vector<2x192xf32> to vector<2x64xf32>
    %240 = vector.extract_strided_slice %237 {offsets = [0, 128], sizes = [2, 64], strides = [1, 1]} : vector<2x192xf32> to vector<2x64xf32>
    %241 = vector.extract_strided_slice %232 {offsets = [0, 192], sizes = [2, 64], strides = [1, 1]} : vector<2x256xf32> to vector<2x64xf32>
    %242 = arith.mulf %239, %204 : vector<2x64xf32>
    %243 = arith.mulf %238, %241 : vector<2x64xf32>
    %244 = arith.addf %242, %243 : vector<2x64xf32>
    %245 = math.tanh %244 : vector<2x64xf32>
    %246 = arith.mulf %240, %245 : vector<2x64xf32>
    %247 = arith.truncf %246 : vector<2x64xf32> to vector<2x64xbf16>
    %248 = tpu.concatenate %247, %226 in 1 : vector<2x64xbf16>, vector<2x64xbf16> -> vector<2x128xbf16>
    %cst_68 = arith.constant dense<0.000000e+00> : vector<2x256xf32>
    %249 = tpu.matmul %248, %2, %cst_68 {dimension_numbers = #tpu.dot_dimension_numbers<[1], [0], [0], [1], [0, 0, 1, 1], [], []>} : vector<2x128xbf16>, vector<128x256xbf16>, vector<2x256xf32> -> vector<2x256xf32>
    %250 = arith.addf %249, %8 : vector<2x256xf32>
    %251 = math.tanh %250 : vector<2x256xf32>
    %252 = vector.extract_strided_slice %251 {offsets = [0, 0], sizes = [2, 192], strides = [1, 1]} : vector<2x256xf32> to vector<2x192xf32>
    %cst_69 = arith.constant 5.000000e-01 : f32
    %253 = vector.broadcast %cst_69 : f32 to vector<2x192xf32>
    %254 = arith.mulf %253, %252 : vector<2x192xf32>
    %cst_70 = arith.constant 5.000000e-01 : f32
    %255 = vector.broadcast %cst_70 : f32 to vector<2x192xf32>
    %256 = arith.addf %254, %255 : vector<2x192xf32>
    %257 = vector.extract_strided_slice %256 {offsets = [0, 0], sizes = [2, 64], strides = [1, 1]} : vector<2x192xf32> to vector<2x64xf32>
    %258 = vector.extract_strided_slice %256 {offsets = [0, 64], sizes = [2, 64], strides = [1, 1]} : vector<2x192xf32> to vector<2x64xf32>
    %259 = vector.extract_strided_slice %256 {offsets = [0, 128], sizes = [2, 64], strides = [1, 1]} : vector<2x192xf32> to vector<2x64xf32>
    %260 = vector.extract_strided_slice %251 {offsets = [0, 192], sizes = [2, 64], strides = [1, 1]} : vector<2x256xf32> to vector<2x64xf32>
    %261 = arith.mulf %258, %223 : vector<2x64xf32>
    %262 = arith.mulf %257, %260 : vector<2x64xf32>
    %263 = arith.addf %261, %262 : vector<2x64xf32>
    %264 = math.tanh %263 : vector<2x64xf32>
    %265 = arith.mulf %259, %264 : vector<2x64xf32>
    %266 = arith.truncf %265 : vector<2x64xf32> to vector<2x64xbf16>
    %c6_i32 = arith.constant 6 : i32
    %267 = arith.index_cast %c6_i32 : i32 to index
    %c0_71 = arith.constant 0 : index
    %c0_72 = arith.constant 0 : index
    %268 = vector.load %arg9[%267, %c0_71, %c0_72] : memref<8x2x256xf32, #tpu.memory_space<vmem>>, vector<1x2x256xf32>
    %269 = vector.shape_cast %268 : vector<1x2x256xf32> to vector<2x256xf32>
    %cst_73 = arith.constant dense<0.000000e+00> : vector<2x256xf32>
    %270 = tpu.matmul %247, %1, %cst_73 {dimension_numbers = #tpu.dot_dimension_numbers<[1], [0], [0], [1], [0, 0, 1, 1], [], []>} : vector<2x64xbf16>, vector<64x256xbf16>, vector<2x256xf32> -> vector<2x256xf32>
    %271 = arith.addf %269, %270 : vector<2x256xf32>
    %272 = math.tanh %271 : vector<2x256xf32>
    %273 = vector.extract_strided_slice %272 {offsets = [0, 0], sizes = [2, 192], strides = [1, 1]} : vector<2x256xf32> to vector<2x192xf32>
    %cst_74 = arith.constant 5.000000e-01 : f32
    %274 = vector.broadcast %cst_74 : f32 to vector<2x192xf32>
    %275 = arith.mulf %274, %273 : vector<2x192xf32>
    %cst_75 = arith.constant 5.000000e-01 : f32
    %276 = vector.broadcast %cst_75 : f32 to vector<2x192xf32>
    %277 = arith.addf %275, %276 : vector<2x192xf32>
    %278 = vector.extract_strided_slice %277 {offsets = [0, 0], sizes = [2, 64], strides = [1, 1]} : vector<2x192xf32> to vector<2x64xf32>
    %279 = vector.extract_strided_slice %277 {offsets = [0, 64], sizes = [2, 64], strides = [1, 1]} : vector<2x192xf32> to vector<2x64xf32>
    %280 = vector.extract_strided_slice %277 {offsets = [0, 128], sizes = [2, 64], strides = [1, 1]} : vector<2x192xf32> to vector<2x64xf32>
    %281 = vector.extract_strided_slice %272 {offsets = [0, 192], sizes = [2, 64], strides = [1, 1]} : vector<2x256xf32> to vector<2x64xf32>
    %282 = arith.mulf %279, %244 : vector<2x64xf32>
    %283 = arith.mulf %278, %281 : vector<2x64xf32>
    %284 = arith.addf %282, %283 : vector<2x64xf32>
    %285 = math.tanh %284 : vector<2x64xf32>
    %286 = arith.mulf %280, %285 : vector<2x64xf32>
    %287 = arith.truncf %286 : vector<2x64xf32> to vector<2x64xbf16>
    %288 = tpu.concatenate %287, %266 in 1 : vector<2x64xbf16>, vector<2x64xbf16> -> vector<2x128xbf16>
    %cst_76 = arith.constant dense<0.000000e+00> : vector<2x256xf32>
    %289 = tpu.matmul %288, %2, %cst_76 {dimension_numbers = #tpu.dot_dimension_numbers<[1], [0], [0], [1], [0, 0, 1, 1], [], []>} : vector<2x128xbf16>, vector<128x256xbf16>, vector<2x256xf32> -> vector<2x256xf32>
    %290 = arith.addf %289, %8 : vector<2x256xf32>
    %291 = math.tanh %290 : vector<2x256xf32>
    %292 = vector.extract_strided_slice %291 {offsets = [0, 0], sizes = [2, 192], strides = [1, 1]} : vector<2x256xf32> to vector<2x192xf32>
    %cst_77 = arith.constant 5.000000e-01 : f32
    %293 = vector.broadcast %cst_77 : f32 to vector<2x192xf32>
    %294 = arith.mulf %293, %292 : vector<2x192xf32>
    %cst_78 = arith.constant 5.000000e-01 : f32
    %295 = vector.broadcast %cst_78 : f32 to vector<2x192xf32>
    %296 = arith.addf %294, %295 : vector<2x192xf32>
    %297 = vector.extract_strided_slice %296 {offsets = [0, 0], sizes = [2, 64], strides = [1, 1]} : vector<2x192xf32> to vector<2x64xf32>
    %298 = vector.extract_strided_slice %296 {offsets = [0, 64], sizes = [2, 64], strides = [1, 1]} : vector<2x192xf32> to vector<2x64xf32>
    %299 = vector.extract_strided_slice %296 {offsets = [0, 128], sizes = [2, 64], strides = [1, 1]} : vector<2x192xf32> to vector<2x64xf32>
    %300 = vector.extract_strided_slice %291 {offsets = [0, 192], sizes = [2, 64], strides = [1, 1]} : vector<2x256xf32> to vector<2x64xf32>
    %301 = arith.mulf %298, %263 : vector<2x64xf32>
    %302 = arith.mulf %297, %300 : vector<2x64xf32>
    %303 = arith.addf %301, %302 : vector<2x64xf32>
    %304 = math.tanh %303 : vector<2x64xf32>
    %305 = arith.mulf %299, %304 : vector<2x64xf32>
    %306 = arith.truncf %305 : vector<2x64xf32> to vector<2x64xbf16>
    %c7_i32 = arith.constant 7 : i32
    %307 = arith.index_cast %c7_i32 : i32 to index
    %c0_79 = arith.constant 0 : index
    %c0_80 = arith.constant 0 : index
    %308 = vector.load %arg9[%307, %c0_79, %c0_80] : memref<8x2x256xf32, #tpu.memory_space<vmem>>, vector<1x2x256xf32>
    %309 = vector.shape_cast %308 : vector<1x2x256xf32> to vector<2x256xf32>
    %cst_81 = arith.constant dense<0.000000e+00> : vector<2x256xf32>
    %310 = tpu.matmul %287, %1, %cst_81 {dimension_numbers = #tpu.dot_dimension_numbers<[1], [0], [0], [1], [0, 0, 1, 1], [], []>} : vector<2x64xbf16>, vector<64x256xbf16>, vector<2x256xf32> -> vector<2x256xf32>
    %311 = arith.addf %309, %310 : vector<2x256xf32>
    %312 = math.tanh %311 : vector<2x256xf32>
    %313 = vector.extract_strided_slice %312 {offsets = [0, 0], sizes = [2, 192], strides = [1, 1]} : vector<2x256xf32> to vector<2x192xf32>
    %cst_82 = arith.constant 5.000000e-01 : f32
    %314 = vector.broadcast %cst_82 : f32 to vector<2x192xf32>
    %315 = arith.mulf %314, %313 : vector<2x192xf32>
    %cst_83 = arith.constant 5.000000e-01 : f32
    %316 = vector.broadcast %cst_83 : f32 to vector<2x192xf32>
    %317 = arith.addf %315, %316 : vector<2x192xf32>
    %318 = vector.extract_strided_slice %317 {offsets = [0, 0], sizes = [2, 64], strides = [1, 1]} : vector<2x192xf32> to vector<2x64xf32>
    %319 = vector.extract_strided_slice %317 {offsets = [0, 64], sizes = [2, 64], strides = [1, 1]} : vector<2x192xf32> to vector<2x64xf32>
    %320 = vector.extract_strided_slice %317 {offsets = [0, 128], sizes = [2, 64], strides = [1, 1]} : vector<2x192xf32> to vector<2x64xf32>
    %321 = vector.extract_strided_slice %312 {offsets = [0, 192], sizes = [2, 64], strides = [1, 1]} : vector<2x256xf32> to vector<2x64xf32>
    %322 = arith.mulf %319, %284 : vector<2x64xf32>
    %323 = arith.mulf %318, %321 : vector<2x64xf32>
    %324 = arith.addf %322, %323 : vector<2x64xf32>
    %325 = math.tanh %324 : vector<2x64xf32>
    %326 = arith.mulf %320, %325 : vector<2x64xf32>
    %327 = arith.truncf %326 : vector<2x64xf32> to vector<2x64xbf16>
    %328 = tpu.concatenate %327, %306 in 1 : vector<2x64xbf16>, vector<2x64xbf16> -> vector<2x128xbf16>
    %cst_84 = arith.constant dense<0.000000e+00> : vector<2x256xf32>
    %329 = tpu.matmul %328, %2, %cst_84 {dimension_numbers = #tpu.dot_dimension_numbers<[1], [0], [0], [1], [0, 0, 1, 1], [], []>} : vector<2x128xbf16>, vector<128x256xbf16>, vector<2x256xf32> -> vector<2x256xf32>
    %330 = arith.addf %329, %8 : vector<2x256xf32>
    %331 = math.tanh %330 : vector<2x256xf32>
    %332 = vector.extract_strided_slice %331 {offsets = [0, 0], sizes = [2, 192], strides = [1, 1]} : vector<2x256xf32> to vector<2x192xf32>
    %cst_85 = arith.constant 5.000000e-01 : f32
    %333 = vector.broadcast %cst_85 : f32 to vector<2x192xf32>
    %334 = arith.mulf %333, %332 : vector<2x192xf32>
    %cst_86 = arith.constant 5.000000e-01 : f32
    %335 = vector.broadcast %cst_86 : f32 to vector<2x192xf32>
    %336 = arith.addf %334, %335 : vector<2x192xf32>
    %337 = vector.extract_strided_slice %336 {offsets = [0, 0], sizes = [2, 64], strides = [1, 1]} : vector<2x192xf32> to vector<2x64xf32>
    %338 = vector.extract_strided_slice %336 {offsets = [0, 64], sizes = [2, 64], strides = [1, 1]} : vector<2x192xf32> to vector<2x64xf32>
    %339 = vector.extract_strided_slice %336 {offsets = [0, 128], sizes = [2, 64], strides = [1, 1]} : vector<2x192xf32> to vector<2x64xf32>
    %340 = vector.extract_strided_slice %331 {offsets = [0, 192], sizes = [2, 64], strides = [1, 1]} : vector<2x256xf32> to vector<2x64xf32>
    %341 = arith.mulf %338, %303 : vector<2x64xf32>
    %342 = arith.mulf %337, %340 : vector<2x64xf32>
    %343 = arith.addf %341, %342 : vector<2x64xf32>
    %344 = math.tanh %343 : vector<2x64xf32>
    %345 = arith.mulf %339, %344 : vector<2x64xf32>
    %346 = arith.truncf %345 : vector<2x64xf32> to vector<2x64xbf16>
    %c8_i32 = arith.constant 8 : i32
    %c0_87 = arith.constant 0 : index
    %c0_88 = arith.constant 0 : index
    %347 = vector.load %arg6[%c0_87, %c0_88] : memref<64x10xbf16, #tpu.memory_space<vmem>>, vector<64x10xbf16>
    %cst_89 = arith.constant dense<0.000000e+00> : vector<2x10xf32>
    %348 = tpu.matmul %346, %347, %cst_89 {dimension_numbers = #tpu.dot_dimension_numbers<[1], [0], [0], [1], [0, 0, 1, 1], [], []>} : vector<2x64xbf16>, vector<64x10xbf16>, vector<2x10xf32> -> vector<2x10xf32>
    %c0_90 = arith.constant 0 : index
    %c0_91 = arith.constant 0 : index
    %349 = vector.load %arg7[%c0_90, %c0_91] : memref<1x10xf32, #tpu.memory_space<vmem>>, vector<1x10xf32>
    %350 = vector.broadcast %349 : vector<1x10xf32> to vector<2x10xf32>
    %351 = arith.addf %348, %350 : vector<2x10xf32>
    %c0_92 = arith.constant 0 : index
    %c0_93 = arith.constant 0 : index
    %352 = vector.load %arg8[%c0_92, %c0_93] : memref<2x10xf32, #tpu.memory_space<vmem>>, vector<2x10xf32>
    tpu.vector_store %arg8[%c0_92, %c0_93], %351 {strides = array<i32>} : memref<2x10xf32, #tpu.memory_space<vmem>>, vector<2x10xf32>,
    return
  }
}

</mosaic_0001>

<bundles_post_ra>
// kernel: rnn_forward.1
= control target key start
LH: loop header
LB: loop body
LE: loop exit
PB: predicated region body
PF: predicated region fallthrough
CT: control target
= control target key end

     0   :  { %13 = vsyncpa [#allocation4], 0  ;;  %s2726_s0 = inlined_call_operand.vmem [shape: f32[2,8,28], index: 0, kind: input, shape index: {}]   ;;  %s2727_s1 = inlined_call_operand.vmem [shape: bf16[28,256], index: 1, kind: input, shape index: {}]   ;;  %s2728_s2 = inlined_call_operand.hbm [shape: bf16[64,256], index: 2, kind: input, shape index: {}]   ;;  %s2729_s3 = inlined_call_operand.vmem [shape: f32[1,256], index: 3, kind: input, shape index: {}]   ;;  %s2730_s4 = inlined_call_operand.hbm [shape: bf16[128,256], index: 4, kind: input, shape index: {}]   ;;  %s2731_s5 = inlined_call_operand.vmem [shape: f32[1,256], index: 5, kind: input, shape index: {}]   ;;  %s2732_s6 = inlined_call_operand.vmem [shape: bf16[64,10], index: 6, kind: input, shape index: {}]   ;;  %s2733_s7 = inlined_call_operand.vmem [shape: f32[1,10], index: 7, kind: input, shape index: {}]   ;;  %s2734_s8 = inlined_call_operand.hbm [shape: f32[2,10], index: 8, kind: output, shape index: {}]  }
   0x1   :  { %14 = vsyncpa [#allocation7], 0 }
   0x2   :  { %15 = vsyncpa [#allocation5], 0  ;;  %s2131_s27 = smov [#allocation3]   ;;  %s2059_s9 = scalar_lea.hbm %s2728_s2, 1024 }
   0x3   :  { %s25_s28 = sshll.u32 %s2131_s27, 4  ;;  %p2060_p0 = scmp.ne.s32.totalorder %s2728_s2, %s2059_s9  ;;  %s26_s28 = int_to_ptr.vmem [resolvable:$true] %s25_s28 }
   0x4   :  { %p2063_p1 = scmp.lt.u32.totalorder %s2059_s9, %s2728_s2 }
   0x6   :  { %p2065_p2 = pnand %p2063_p1, %p2060_p0 }
   0x8   :  { %2068 = shalt.err (!%p2065_p2)
}
   0x9   :  { %s2069_s14 = scalar_lea.vmem %s26_s28, 1024  ;;  %p2074_p4 = scmp.lt.s32.totalorder %s26_s28, %s26_s28 }
   0xa   :  { %p2070_p3 = scmp.ne.s32.totalorder %s26_s28, %s2069_s14  ;;  %p2075_p5 = scmp.lt.s32.totalorder %s2069_s14, %s2069_s14 }
   0xc   :  { %p2076_p6 = por %p2075_p5, %p2074_p4 }
   0xe   :  { %p2077_p7 = pnand %p2076_p6, %p2070_p3 }
  0x10   :  { %2080 = shalt.err (!%p2077_p7)
}
  0x11   :  { %s2132_s15 = smov 128   ;;  %s2133_s16 = smov 8  }
  0x12   :  { %31 = dma.hbm_to_vmem [thread:$0]  %s2728_s2, 1024, %s26_s28, [#allocation4], %s2132_s15, %s2132_s15, %s2133_s16  }
  0x13   :  { %s2134_s19 = smov [#allocation6]   ;;  %s2081_s23 = scalar_lea.hbm %s2730_s4, 2048 }
  0x14   :  { %s39_s20 = sshll.u32 %s2134_s19, 4  ;;  %p2082_p8 = scmp.ne.s32.totalorder %s2730_s4, %s2081_s23  ;;  %s40_s20 = int_to_ptr.vmem [resolvable:$true] %s39_s20 }
  0x15   :  { %p2085_p9 = scmp.lt.u32.totalorder %s2081_s23, %s2730_s4 }
  0x17   :  { %p2087_p10 = pnand %p2085_p9, %p2082_p8 }
  0x19   :  { %2090 = shalt.err (!%p2087_p10)
}
  0x1a   :  { %s2091_s29 = scalar_lea.vmem %s40_s20, 2048  ;;  %p2096_p12 = scmp.lt.s32.totalorder %s40_s20, %s40_s20 }
  0x1b   :  { %p2092_p11 = scmp.ne.s32.totalorder %s40_s20, %s2091_s29  ;;  %p2097_p13 = scmp.lt.s32.totalorder %s2091_s29, %s2091_s29 }
  0x1d   :  { %p2098_p0 = por %p2097_p13, %p2096_p12 }
  0x1f   :  { %p2099_p1 = pnand %p2098_p0, %p2092_p11 }
  0x21   :  { %2102 = shalt.err (!%p2099_p1)
}
  0x22   :  { %45 = dma.hbm_to_vmem [thread:$0]  %s2730_s4, 2048, %s40_s20, [#allocation7], %s2132_s15, %s2132_s15, %s2133_s16  }
  0x23   :  { %2125 = dma.done.wait [#allocation4], 1024  }
  0x24   :  { %2126 = vsyncadd [#allocation4], 4294966272 }
  0x25   :  { %2127 = dma.done.wait [#allocation7], 2048  }
  0x26   :  { %2128 = vsyncadd [#allocation7], 4294965248  ;;  %v2135_v0 = vmov 0   ;;  %v1909_v1 = vld [vmem:[%s2727_s1 + $0x4] ss:$8 sps:$4 sm:$0xff]   ;;  %vm135_vm0 = vcmask 1045504   ;;  %v89_v18 = vlaneseq }
  0x27   :  { %174 = vmatprep.mubr.bf16.mxu1 %v2135_v0  ;;  %462 = vmatprep.mubr.bf16.mxu0 %v2135_v0  ;;  %v1911_v2 = vld [vmem:[%s2727_s1] ss:$8 sps:$4 sm:$0xff]   ;;  %v1912_v3 = vld [vmem:[%s2727_s1 + $0x14] ss:$8 sps:$4 sm:$0x3f]   ;;  %vm131_vm1 = vcmask 228352  }
  0x28   :  { %142 = vmatprep.subr.bf16.mxu1 %v1909_v1  ;;  %v1914_v4 = vld [vmem:[%s2727_s1 + $0x10] ss:$8 sps:$4 sm:$0x3f]   ;;  %v111_v5 = vld [vmem:[%s2726_s0] sm:$0xff]  ;;  %v2234_v9 = vld [vmem:[#allocation3 + $0x14] ss:$8 sps:$4 sm:$0xff]  }
  0x29   :  { %143 = vmatpush1.bf16.msra.mxu1 %v1911_v2  ;;  %v137_v6 = vsel %vm135_vm0, %v1914_v4, 0  ;;  %v2230_v7 = vld [vmem:[#allocation3 + $0x4] ss:$8 sps:$4 sm:$0xff]   ;;  %v2232_v8 = vld [vmem:[#allocation3] ss:$8 sps:$4 sm:$0xff]   ;;  %v112_v10 = vpack.c.bf16 %v111_v5, %v111_v5  ;;  %v2272_v19 = vshrl.u32 %v89_v18, 7 }
  0x2a   :  { %1838 = vmatprep.subr.msk.bf16.mxu1 %vm135_vm0, %v1912_v3  ;;  %430 = vmatprep.subr.bf16.mxu0 %v2230_v7  ;;  %v2239_v11 = vld [vmem:[#allocation3 + $0x10] ss:$8 sps:$4 sm:$0xff]   ;;  %v1840_v12 = vld [vmem:[%s2726_s0 + $0x8] sm:$0xff]  ;;  %v2250_v15 = vld [vmem:[#allocation3 + $0x34] ss:$8 sps:$4 sm:$0xff]   ;;  %vm2284_vm2 = vcmp.lt.s32.totalorder %v89_v18, 256 }
  0x2b   :  { %431 = vmatpush1.bf16.msra.mxu0 %v2232_v8  ;;  %v2244_v13 = vld [vmem:[#allocation3 + $0x24] ss:$8 sps:$4 sm:$0xff]   ;;  %v2247_v14 = vld [vmem:[#allocation3 + $0x20] ss:$8 sps:$4 sm:$0xff]   ;;  %v264_v16 = vpack.c.bf16 %v1840_v12, %v1840_v12  ;;  %v2255_v17 = vld [vmem:[#allocation3 + $0x30] ss:$8 sps:$4 sm:$0xff]  }
  0x2c   :  { %432 = vmatprep.subr.bf16.mxu0 %v2234_v9  ;;  %v91_v20 = vsub.s32 0, %v2272_v19  ;;  %v87_v21 = vld [vmem:[%s2729_s3] sm:$0x3]  ;;  %v2136_v22 = vmov 1966171168   ;;  %v95_v24 = vsub.s32 1, %v2272_v19 }
  0x2d   :  { %145 = vmatpush1.bf16.msra.mxu1 %v137_v6  ;;  %v188_v23 = vunpack.c.l.s4 %v2136_v22  ;;  %v2137_v45 = vmov 1983009808   ;;  %s2138_s3 = smov 64   ;;  %v2335_v39 = vld [vmem:[#allocation6 + $0x10] ss:$8 sps:$4 sm:$0xff]   ;;  %vm426_vm3 = vcmask 523264  }
  0x2e   :  { %268 = vmatprep.subr.bf16.mxu1 %v1909_v1  ;;  %v92_v25 = vrot.slane %v87_v21, %v91_v20  ;;  %v96_v27 = vrot.slane %v87_v21, %v95_v24  ;;  %v475_v46 = vunpack.c.l.s4 %v2137_v45  ;;  %v2353_v45 = vld [vmem:[#allocation6 + $0x40] ss:$8 sps:$4 sm:$0xff]   ;;  %vm2140_vm4 = vmmov 0   ;;  %s2141_s28 = smov [#allocation8]  }
  0x2f   :  { %433 = vmatpush1.bf16.msra.mxu0 %v2239_v11  ;;  %v189_v26 = vunpack.c.0.s8 %v188_v23  ;;  %vm1816_vm5 = vcmask 74752  }
  0x30   :  { %1839 = vmatmul.mubr.msk.bf16.vlgmr.msra.gmra.mrb[0].mxu1 %vm131_vm1, %v112_v10  ;;  %434 = vmatprep.subr.bf16.mxu0 %v2244_v13  ;;  %v476_v61 = vunpack.c.0.s8 %v475_v46  ;;  %v2356_v46 = vld [vmem:[#allocation6 + $0x54] ss:$8 sps:$4 sm:$0xff]  }
  0x31   :  { %269 = vmatpush1.bf16.msra.mxu1 %v1911_v2  ;;  %300 = vmatprep.mubr.bf16.mxu1 %v2135_v0  ;;  %v192_v31 = vsub.s32 %v189_v26, %v2272_v19 }
  0x32   :  { %1841 = vmatprep.subr.msk.bf16.mxu1 %vm135_vm0, %v1912_v3 }
  0x33   :  { %435 = vmatpush1.bf16.msra.mxu0 %v2247_v14 }
  0x34   :  { %436 = vmatprep.subr.bf16.mxu0 %v2250_v15 }
  0x35   :  { %271 = vmatpush1.bf16.msra.mxu1 %v137_v6 }
  0x37   :  { %437 = vmatpush1.bf16.msra.mxu0 %v2255_v17 }
  0x38   :  { %1842 = vmatmul.mubr.msk.bf16.vlgmr.msra.gmra.mrb[4].mxu1 %vm131_vm1, %v264_v16  ;;  %660 = vmatprep.subr.bf16.mxu0 %v2230_v7  ;;  %v2305_v16 = vsub.s32 %v476_v61, %v2272_v19 }
  0x39   :  { %623 = vmatprep.mubr.bf16.mxu1 %v2135_v0 }
  0x3a   :  { %463 = vmatmul.mubr.bf16.vlgmr.msra.gmra.mrb[0].mxu0 %v2135_v0 }
  0x3b   :  { %661 = vmatpush1.bf16.msra.mxu0 %v2232_v8  ;;  %692 = vmatprep.mubr.bf16.mxu0 %v2135_v0 }
  0x3c   :  { %662 = vmatprep.subr.bf16.mxu0 %v2234_v9 }
  0x3f   :  { %663 = vmatpush1.bf16.msra.mxu0 %v2239_v11 }
  0x40   :  { %664 = vmatprep.subr.bf16.mxu0 %v2244_v13 }
  0x43   :  { %665 = vmatpush1.bf16.msra.mxu0 %v2247_v14 }
  0x44   :  { %666 = vmatprep.subr.bf16.mxu0 %v2250_v15 }
  0x47   :  { %667 = vmatpush1.bf16.msra.mxu0 %v2255_v17 }
 0x103   :  { %v176_v28 = vpop.f32.mrb[0].mxu1 }
 0x104   :  { %v177_v29 = vadd.f32 %v176_v28, %v92_v25  ;;  %v178_v30 = vpop.f32.mrb[1].mxu1 }
 0x105   :  { %v179_v32 = vadd.f32 %v178_v30, %v96_v27  ;;  %v180_v33 = vpop.f32.mrb[2].mxu1 }
 0x106   :  { %v181_v34 = vpop.f32.mrb[3].mxu1 }
 0x107   :  { %v185_v35 = vcombine.low %v177_v29, %v179_v32  ;;  %v186_v36 = vcombine.high %v177_v29, %v179_v32 }
 0x109   :  { %v193_v37 = vrot.slane %v185_v35, %v192_v31  ;;  %v200_v38 = vrot.slane %v186_v36, %v192_v31  ;;  %v2326_v36 = vld [vmem:[#allocation6 + $0x4] ss:$8 sps:$4 sm:$0xff]  }
 0x10a   :  { %591 = vmatprep.subr.bf16.mxu1 %v2326_v36  ;;  %745 = vmatprep.subr.bf16.mxu0 %v2326_v36 }
 0x10b   :  { %v201_v40 = vcombine.high %v193_v37, %v193_v37  ;;  %v202_v41 = vcombine.high %v200_v38, %v200_v38  ;;  %v209_v42 = vrot.slane %v193_v37, %v192_v31  ;;  %v216_v43 = vrot.slane %v200_v38, %v192_v31  ;;  %v302_v44 = vpop.f32.mrb[4].mxu1  ;;  %v2328_v37 = vld [vmem:[#allocation6] ss:$8 sps:$4 sm:$0xff]   ;;  %v2330_v38 = vld [vmem:[#allocation6 + $0x14] ss:$8 sps:$4 sm:$0xff]  }
 0x10c   :  { %v303_v47 = vadd.f32 %v302_v44, %v92_v25  ;;  %v304_v48 = vpop.f32.mrb[5].mxu1  ;;  %592 = vmatpush1.bf16.msra.mxu1 %v2328_v37  ;;  %v2350_v44 = vld [vmem:[#allocation6 + $0x44] ss:$8 sps:$4 sm:$0xff]  }
 0x10d   :  { %v223_v49 = vrot.slane %v201_v40, %v192_v31  ;;  %v230_v50 = vrot.slane %v202_v41, %v192_v31  ;;  %v231_v51 = vcombine.high %v209_v42, %v209_v42  ;;  %v232_v52 = vcombine.high %v216_v43, %v216_v43  ;;  %247 = vst.msk [vmem:[#allocation2] ss:$2 sm:$0x3] %vm2284_vm2, %v209_v42  ;;  %v306_v53 = vpop.f32.mrb[6].mxu1  ;;  %v464_v60 = vpop.f32.mrb[0].mxu0 }
 0x10e   :  { %255 = vst.msk [vmem:[#allocation2 + $0x10] ss:$2 sm:$0x3] %vm2284_vm2, %v216_v43  ;;  %v305_v54 = vadd.f32 %v304_v48, %v96_v27  ;;  %v307_v55 = vpop.f32.mrb[7].mxu1  ;;  %v466_v62 = vpop.f32.mrb[1].mxu0  ;;  %593 = vmatprep.subr.bf16.mxu1 %v2330_v38 }
 0x10f   :  { %v233_v56 = vcombine.high %v223_v49, %v223_v49  ;;  %v234_v57 = vcombine.high %v230_v50, %v230_v50  ;;  %249 = vst.msk [vmem:[#allocation2 + $0x4] ss:$2 sm:$0x3] %vm2284_vm2, %v223_v49  ;;  %251 = vst.msk [vmem:[#allocation2 + $0x8] ss:$2 sm:$0x3] %vm2284_vm2, %v231_v51  ;;  %v473_v2 = vcombine.low %v464_v60, %v466_v62 }
 0x110   :  { %257 = vst.msk [vmem:[#allocation2 + $0x14] ss:$2 sm:$0x3] %vm2284_vm2, %v230_v50  ;;  %259 = vst.msk [vmem:[#allocation2 + $0x18] ss:$2 sm:$0x3] %vm2284_vm2, %v232_v52  ;;  %v311_v58 = vcombine.low %v303_v47, %v305_v54  ;;  %v312_v59 = vcombine.high %v303_v47, %v305_v54  ;;  %594 = vmatpush1.bf16.msra.mxu1 %v2335_v39 }
 0x111   :  { %253 = vst.msk [vmem:[#allocation2 + $0xc] ss:$2 sm:$0x3] %vm2284_vm2, %v233_v56  ;;  %261 = vst.msk [vmem:[#allocation2 + $0x1c] ss:$2 sm:$0x3] %vm2284_vm2, %v234_v57  ;;  %v480_v27 = vrot.slane %v473_v2, %v2305_v16 }
 0x112   :  { %v319_v63 = vrot.slane %v311_v58, %v192_v31  ;;  %v326_v1 = vrot.slane %v312_v59, %v192_v31  ;;  %v468_v3 = vpop.f32.mrb[2].mxu0  ;;  %v2338_v40 = vld [vmem:[#allocation6 + $0x24] ss:$8 sps:$4 sm:$0xff]   ;;  %v2341_v41 = vld [vmem:[#allocation6 + $0x20] ss:$8 sps:$4 sm:$0xff]  }
 0x113   :  { %v469_v4 = vpop.f32.mrb[3].mxu0  ;;  %595 = vmatprep.subr.bf16.mxu1 %v2338_v40  ;;  %v2344_v42 = vld [vmem:[#allocation6 + $0x34] ss:$8 sps:$4 sm:$0xff]   ;;  %v2347_v43 = vld [vmem:[#allocation6 + $0x30] ss:$8 sps:$4 sm:$0xff]  }
 0x114   :  { %v327_v5 = vcombine.high %v319_v63, %v319_v63  ;;  %v328_v6 = vcombine.high %v326_v1, %v326_v1  ;;  %v335_v10 = vrot.slane %v319_v63, %v192_v31  ;;  %v342_v12 = vrot.slane %v326_v1, %v192_v31  ;;  %596 = vmatpush1.bf16.msra.mxu1 %v2341_v41  ;;  %v2359_v47 = vld [vmem:[#allocation6 + $0x50] ss:$8 sps:$4 sm:$0xff]   ;;  %v2362_v48 = vld [vmem:[#allocation6 + $0x64] ss:$8 sps:$4 sm:$0xff]   ;;  %v2365_v49 = vld [vmem:[#allocation6 + $0x60] ss:$8 sps:$4 sm:$0xff]  }
 0x115   :  { %597 = vmatprep.subr.bf16.mxu1 %v2344_v42  ;;  %v2369_v51 = vld [vmem:[#allocation6 + $0x74] ss:$8 sps:$4 sm:$0xff]   ;;  %v2371_v53 = vld [vmem:[#allocation6 + $0x70] ss:$8 sps:$4 sm:$0xff]   ;;  %v99_v60 = vld [vmem:[%s2731_s5] sm:$0x3] }
 0x116   :  { %v349_v18 = vrot.slane %v327_v5, %v192_v31  ;;  %v356_v21 = vrot.slane %v328_v6, %v192_v31  ;;  %v357_v22 = vcombine.high %v335_v10, %v335_v10  ;;  %v358_v23 = vcombine.high %v342_v12, %v342_v12  ;;  %370 = vst.msk [vmem:[#allocation2 + $0x1] ss:$2 sm:$0x3] %vm2284_vm2, %v335_v10 }
 0x117   :  { %378 = vst.msk [vmem:[#allocation2 + $0x11] ss:$2 sm:$0x3] %vm2284_vm2, %v342_v12  ;;  %v2413_v61 = vrot.slane %v99_v60, %v95_v24 }
 0x118   :  { %v359_v25 = vcombine.high %v349_v18, %v349_v18  ;;  %v360_v26 = vcombine.high %v356_v21, %v356_v21  ;;  %372 = vst.msk [vmem:[#allocation2 + $0x5] ss:$2 sm:$0x3] %vm2284_vm2, %v349_v18  ;;  %374 = vst.msk [vmem:[#allocation2 + $0x9] ss:$2 sm:$0x3] %vm2284_vm2, %v357_v22  ;;  %598 = vmatpush1.bf16.msra.mxu1 %v2347_v43 }
 0x119   :  { %380 = vst.msk [vmem:[#allocation2 + $0x15] ss:$2 sm:$0x3] %vm2284_vm2, %v356_v21  ;;  %382 = vst.msk [vmem:[#allocation2 + $0x19] ss:$2 sm:$0x3] %vm2284_vm2, %v358_v23  ;;  %599 = vmatprep.subr.bf16.mxu1 %v2350_v44 }
 0x11a   :  { %376 = vst.msk [vmem:[#allocation2 + $0xd] ss:$2 sm:$0x3] %vm2284_vm2, %v359_v25  ;;  %384 = vst.msk [vmem:[#allocation2 + $0x1d] ss:$2 sm:$0x3] %vm2284_vm2, %v360_v26  ;;  %v2421_v25 = vrot.slane %v99_v60, %v91_v20 }
 0x11c   :  { %600 = vmatpush1.bf16.msra.mxu1 %v2353_v45 }
 0x11d   :  { %v385_v28 = vld [vmem:[#allocation2] sm:$0xf]  ;;  %601 = vmatprep.subr.bf16.mxu1 %v2356_v46 }
 0x11e   :  { %v482_v29 = vadd.f32 %v480_v27, %v385_v28 }
 0x11f   :  { %v657_v21 = vld [vmem:[#allocation2 + $0x4] sm:$0xf] }
 0x120   :  { %1955 = vtanh.f32 %v482_v29  ;;  %602 = vmatpush1.bf16.msra.mxu1 %v2359_v47 }
 0x121   :  { %603 = vmatprep.subr.bf16.mxu1 %v2362_v48 }
 0x124   :  { %604 = vmatpush1.bf16.msra.mxu1 %v2365_v49 }
 0x125   :  { %605 = vmatprep.subr.bf16.mxu1 %v2369_v51 }
 0x128   :  { %606 = vmatpush1.bf16.msra.mxu1 %v2371_v53 }
 0x129   :  { %814 = vmatprep.subr.bf16.mxu1 %v2230_v7 }
 0x12a   :  { %v1956_v30 = vpop.eup %1955 }
 0x12b   :  { %488 = vrot.lane.b32.xlu0 %v1956_v30, %s2138_s3  ;;  %v484_v31 = vmul.f32 0.5, %v1956_v30 }
 0x12d   :  { %v485_v33 = vadd.f32 0.5, %v484_v31 }
 0x12f   :  { %v486_v50 = vmul.f32 0.0, %v485_v33  ;;  %v500_v56 = vrot.slane %v485_v33, 2 }
 0x19d   :  { %v489_v32 = vpop.permute.xlu0 %488 }
 0x19e   :  { %v490_v34 = vrot.slane %v489_v32, 2 }
 0x1a0   :  { %v492_v35 = vmul.f32 %v490_v34, %v485_v33 }
 0x1a2   :  { %494 = vrot.lane.b32.xlu0 %v492_v35, %s2138_s3 }
 0x214   :  { %v495_v52 = vpop.permute.xlu0 %494 }
 0x215   :  { %v2373_v54 = vadd.f32 %v495_v52, %v486_v50 }
 0x217   :  { %1957 = vtanh.f32 %v2373_v54 }
 0x221   :  { %v1958_v55 = vpop.eup %1957 }
 0x222   :  { %503 = vrot.lane.b32.xlu1 %v1958_v55, %s2138_s3 }
 0x294   :  { %v504_v57 = vpop.permute.xlu1 %503 }
 0x295   :  { %v506_v58 = vmul.f32 %v504_v57, %v500_v56 }
 0x297   :  { %v507_v59 = vpack.c.bf16 %v506_v58, %v506_v58 }
 0x299   :  { %1867 = vmatmul.mubr.msk.bf16.vlgmr.msra.gmra.mrb[8].mxu1 %vm426_vm3, %v507_v59  ;;  %1868 = vmatmul.mubr.msk.bf16.vlgmr.msra.gmra.mrb[4].mxu0 %vm426_vm3, %v507_v59 }
 0x29a   :  { %815 = vmatpush1.bf16.msra.mxu1 %v2232_v8  ;;  %846 = vmatprep.mubr.bf16.mxu1 %v2135_v0 }
 0x29b   :  { %816 = vmatprep.subr.bf16.mxu1 %v2234_v9  ;;  %746 = vmatpush1.bf16.msra.mxu0 %v2328_v37 }
 0x29c   :  { %747 = vmatprep.subr.bf16.mxu0 %v2330_v38  ;;  %777 = vmatprep.mubr.bf16.mxu0 %v2135_v0 }
 0x29e   :  { %817 = vmatpush1.bf16.msra.mxu1 %v2239_v11 }
 0x29f   :  { %818 = vmatprep.subr.bf16.mxu1 %v2244_v13  ;;  %748 = vmatpush1.bf16.msra.mxu0 %v2335_v39 }
 0x2a0   :  { %749 = vmatprep.subr.bf16.mxu0 %v2338_v40 }
 0x2a2   :  { %819 = vmatpush1.bf16.msra.mxu1 %v2247_v14 }
 0x2a3   :  { %820 = vmatprep.subr.bf16.mxu1 %v2250_v15  ;;  %750 = vmatpush1.bf16.msra.mxu0 %v2341_v41 }
 0x2a4   :  { %751 = vmatprep.subr.bf16.mxu0 %v2344_v42 }
 0x2a6   :  { %821 = vmatpush1.bf16.msra.mxu1 %v2255_v17 }
 0x2a7   :  { %752 = vmatpush1.bf16.msra.mxu0 %v2347_v43  ;;  %899 = vmatprep.subr.bf16.mxu1 %v2326_v36 }
 0x2a8   :  { %753 = vmatprep.subr.bf16.mxu0 %v2350_v44 }
 0x2ab   :  { %754 = vmatpush1.bf16.msra.mxu0 %v2353_v45 }
 0x2ac   :  { %755 = vmatprep.subr.bf16.mxu0 %v2356_v46 }
 0x2af   :  { %756 = vmatpush1.bf16.msra.mxu0 %v2359_v47 }
 0x2b0   :  { %757 = vmatprep.subr.bf16.mxu0 %v2362_v48 }
 0x2b3   :  { %758 = vmatpush1.bf16.msra.mxu0 %v2365_v49 }
 0x2b4   :  { %759 = vmatprep.subr.bf16.mxu0 %v2369_v51 }
 0x2b7   :  { %760 = vmatpush1.bf16.msra.mxu0 %v2371_v53 }
 0x2b8   :  { %968 = vmatprep.subr.bf16.mxu0 %v2230_v7 }
 0x36c   :  { %v625_v62 = vpop.f32.mrb[8].mxu1  ;;  %v694_v63 = vpop.f32.mrb[4].mxu0 }
 0x36d   :  { %v627_v1 = vpop.f32.mrb[9].mxu1  ;;  %v696_v2 = vpop.f32.mrb[5].mxu0  ;;  %v626_v26 = vadd.f32 %v625_v62, %v2421_v25 }
 0x36e   :  { %v628_v3 = vadd.f32 %v627_v1, %v2413_v61  ;;  %v703_v4 = vcombine.low %v694_v63, %v696_v2  ;;  %v629_v5 = vpop.f32.mrb[10].mxu1  ;;  %v698_v6 = vpop.f32.mrb[6].mxu0 }
 0x36f   :  { %v630_v10 = vpop.f32.mrb[11].mxu1  ;;  %v699_v12 = vpop.f32.mrb[7].mxu0 }
 0x370   :  { %1959 = vtanh.f32 %v628_v3  ;;  %v710_v18 = vrot.slane %v703_v4, %v2305_v16 }
 0x372   :  { %v712_v22 = vadd.f32 %v710_v18, %v657_v21 }
 0x374   :  { %1961 = vtanh.f32 %v712_v22 }
 0x375   :  { %1963 = vtanh.f32 %v626_v26  ;;  %v811_v26 = vld [vmem:[#allocation2 + $0x8] sm:$0xf] }
 0x37a   :  { %v1960_v23 = vpop.eup %1959 }
 0x37b   :  { %640 = vrot.lane.b32.xlu1 %v1960_v23, %s2138_s3  ;;  %v635_v60 = vmul.f32 0.5, %v1960_v23 }
 0x37d   :  { %v637_v62 = vadd.f32 0.5, %v635_v60 }
 0x37e   :  { %v1962_v24 = vpop.eup %1961 }
 0x37f   :  { %718 = vrot.lane.b32.xlu0 %v1962_v24, %s2138_s3  ;;  %v1964_v27 = vpop.eup %1963  ;;  %v714_v32 = vmul.f32 0.5, %v1962_v24 }
 0x380   :  { %v634_v28 = vmul.f32 0.5, %v1964_v27 }
 0x381   :  { %v715_v34 = vadd.f32 0.5, %v714_v32 }
 0x382   :  { %v636_v29 = vadd.f32 0.5, %v634_v28 }
 0x383   :  { %v716_v55 = vmul.f32 %v715_v34, %v2373_v54  ;;  %v730_v3 = vrot.slane %v715_v34, 2 }
 0x384   :  { %v638_v19 = vmul.f32 0.0, %v636_v29 }
 0x3ed   :  { %v641_v30 = vpop.permute.xlu1 %640 }
 0x3ee   :  { %v643_v31 = vmul.f32 %v641_v30, %v636_v29 }
 0x3f0   :  { %645 = vrot.lane.b32.xlu1 %v643_v31, %s2138_s3 }
 0x3f1   :  { %v719_v33 = vpop.permute.xlu0 %718 }
 0x3f2   :  { %v720_v35 = vrot.slane %v719_v33, 2 }
 0x3f4   :  { %v722_v50 = vmul.f32 %v720_v35, %v715_v34 }
 0x3f6   :  { %724 = vrot.lane.b32.xlu0 %v722_v50, %s2138_s3 }
 0x462   :  { %v646_v20 = vpop.permute.xlu1 %645 }
 0x463   :  { %v2426_v52 = vadd.f32 %v646_v20, %v638_v19 }
 0x465   :  { %1965 = vtanh.f32 %v2426_v52 }
 0x468   :  { %v725_v56 = vpop.permute.xlu0 %724 }
 0x469   :  { %v2430_v57 = vadd.f32 %v725_v56, %v716_v55 }
 0x46b   :  { %1967 = vtanh.f32 %v2430_v57 }
 0x46f   :  { %v1966_v58 = vpop.eup %1965 }
 0x470   :  { %651 = vrot.lane.b32.xlu1 %v1966_v58, %s2138_s3 }
 0x475   :  { %v1968_v59 = vpop.eup %1967 }
 0x476   :  { %733 = vrot.lane.b32.xlu0 %v1968_v59, %s2138_s3 }
 0x4e2   :  { %v652_v63 = vpop.permute.xlu1 %651 }
 0x4e3   :  { %v654_v1 = vmul.f32 %v652_v63, %v637_v62 }
 0x4e5   :  { %v655_v2 = vpack.c.bf16 %v654_v1, %v654_v1 }
 0x4e7   :  { %739 = vrot.lane.b32.xlu1 %v655_v2, %s2138_s3 }
 0x4e8   :  { %v734_v54 = vpop.permute.xlu0 %733 }
 0x4e9   :  { %v736_v4 = vmul.f32 %v734_v54, %v730_v3 }
 0x4eb   :  { %v737_v5 = vpack.c.bf16 %v736_v4, %v736_v4 }
 0x4ed   :  { %1869 = vmatmul.mubr.msk.bf16.vlgmr.msra.gmra.mrb[12].mxu1 %vm426_vm3, %v737_v5 }
 0x4ee   :  { %900 = vmatpush1.bf16.msra.mxu1 %v2328_v37  ;;  %931 = vmatprep.mubr.bf16.mxu1 %v2135_v0 }
 0x4ef   :  { %901 = vmatprep.subr.bf16.mxu1 %v2330_v38 }
 0x4f2   :  { %902 = vmatpush1.bf16.msra.mxu1 %v2335_v39 }
 0x4f3   :  { %903 = vmatprep.subr.bf16.mxu1 %v2338_v40 }
 0x4f6   :  { %904 = vmatpush1.bf16.msra.mxu1 %v2341_v41 }
 0x4f7   :  { %905 = vmatprep.subr.bf16.mxu1 %v2344_v42 }
 0x4fa   :  { %906 = vmatpush1.bf16.msra.mxu1 %v2347_v43 }
 0x4fb   :  { %907 = vmatprep.subr.bf16.mxu1 %v2350_v44 }
 0x4fe   :  { %908 = vmatpush1.bf16.msra.mxu1 %v2353_v45 }
 0x4ff   :  { %909 = vmatprep.subr.bf16.mxu1 %v2356_v46 }
 0x502   :  { %910 = vmatpush1.bf16.msra.mxu1 %v2359_v47 }
 0x503   :  { %911 = vmatprep.subr.bf16.mxu1 %v2362_v48 }
 0x506   :  { %912 = vmatpush1.bf16.msra.mxu1 %v2365_v49 }
 0x507   :  { %913 = vmatprep.subr.bf16.mxu1 %v2369_v51 }
 0x50a   :  { %914 = vmatpush1.bf16.msra.mxu1 %v2371_v53 }
 0x50b   :  { %1122 = vmatprep.subr.bf16.mxu1 %v2230_v7 }
 0x559   :  { %v740_v6 = vpop.permute.xlu1 %739 }
 0x55a   :  { %v743_v10 = vsel %vm426_vm3, %v737_v5, %v740_v6 }
 0x55b   :  { %778 = vmatmul.mubr.bf16.vlgmr.msra.gmra.mrb[8].mxu0 %v743_v10 }
 0x55c   :  { %969 = vmatpush1.bf16.msra.mxu0 %v2232_v8  ;;  %1000 = vmatprep.mubr.bf16.mxu0 %v2135_v0 }
 0x55d   :  { %970 = vmatprep.subr.bf16.mxu0 %v2234_v9 }
 0x560   :  { %971 = vmatpush1.bf16.msra.mxu0 %v2239_v11 }
 0x561   :  { %972 = vmatprep.subr.bf16.mxu0 %v2244_v13 }
 0x564   :  { %973 = vmatpush1.bf16.msra.mxu0 %v2247_v14 }
 0x565   :  { %974 = vmatprep.subr.bf16.mxu0 %v2250_v15 }
 0x568   :  { %975 = vmatpush1.bf16.msra.mxu0 %v2255_v17 }
 0x569   :  { %1053 = vmatprep.subr.bf16.mxu0 %v2326_v36 }
 0x5c0   :  { %v848_v12 = vpop.f32.mrb[12].mxu1 }
 0x5c1   :  { %v850_v18 = vpop.f32.mrb[13].mxu1 }
 0x5c2   :  { %v857_v21 = vcombine.low %v848_v12, %v850_v18  ;;  %v852_v22 = vpop.f32.mrb[14].mxu1 }
 0x5c3   :  { %v853_v23 = vpop.f32.mrb[15].mxu1 }
 0x5c4   :  { %v864_v24 = vrot.slane %v857_v21, %v2305_v16 }
 0x5c6   :  { %v866_v27 = vadd.f32 %v864_v24, %v811_v26 }
 0x5c8   :  { %1969 = vtanh.f32 %v866_v27 }
 0x5d2   :  { %v1970_v28 = vpop.eup %1969 }
 0x5d3   :  { %872 = vrot.lane.b32.xlu1 %v1970_v28, %s2138_s3  ;;  %v868_v35 = vmul.f32 0.5, %v1970_v28 }
 0x5d5   :  { %v869_v19 = vadd.f32 0.5, %v868_v35 }
 0x5d7   :  { %v870_v1 = vmul.f32 %v869_v19, %v2430_v57  ;;  %v884_v12 = vrot.slane %v869_v19, 2 }
 0x62e   :  { %v779_v29 = vpop.f32.mrb[8].mxu0 }
 0x62f   :  { %v781_v30 = vpop.f32.mrb[9].mxu0  ;;  %v780_v56 = vadd.f32 %v779_v29, %v2421_v25 }
 0x630   :  { %v782_v31 = vadd.f32 %v781_v30, %v2413_v61  ;;  %v783_v32 = vpop.f32.mrb[10].mxu0 }
 0x631   :  { %v784_v33 = vpop.f32.mrb[11].mxu0 }
 0x632   :  { %1971 = vtanh.f32 %v782_v31  ;;  %v965_v33 = vld [vmem:[#allocation2 + $0xc] sm:$0xf] }
 0x633   :  { %1973 = vtanh.f32 %v780_v56 }
 0x63c   :  { %v1972_v34 = vpop.eup %1971 }
 0x63d   :  { %794 = vrot.lane.b32.xlu0 %v1972_v34, %s2138_s3  ;;  %v1974_v58 = vpop.eup %1973 }
 0x63e   :  { %v788_v59 = vmul.f32 0.5, %v1974_v58 }
 0x640   :  { %v790_v60 = vadd.f32 0.5, %v788_v59 }
 0x642   :  { %v792_v4 = vmul.f32 %v790_v60, %v2426_v52  ;;  %v789_v52 = vmul.f32 0.5, %v1972_v34 }
 0x644   :  { %v791_v22 = vadd.f32 0.5, %v789_v52 }
 0x645   :  { %v873_v50 = vpop.permute.xlu1 %872 }
 0x646   :  { %v874_v20 = vrot.slane %v873_v50, 2 }
 0x648   :  { %v876_v55 = vmul.f32 %v874_v20, %v869_v19 }
 0x64a   :  { %878 = vrot.lane.b32.xlu1 %v876_v55, %s2138_s3 }
 0x6af   :  { %v795_v62 = vpop.permute.xlu0 %794 }
 0x6b0   :  { %v797_v63 = vmul.f32 %v795_v62, %v790_v60 }
 0x6b2   :  { %799 = vrot.lane.b32.xlu0 %v797_v63, %s2138_s3 }
 0x6bc   :  { %v879_v2 = vpop.permute.xlu1 %878 }
 0x6bd   :  { %v2472_v3 = vadd.f32 %v879_v2, %v870_v1 }
 0x6bf   :  { %1975 = vtanh.f32 %v2472_v3 }
 0x6c9   :  { %v1976_v54 = vpop.eup %1975 }
 0x6ca   :  { %887 = vrot.lane.b32.xlu1 %v1976_v54, %s2138_s3 }
 0x724   :  { %v800_v5 = vpop.permute.xlu0 %799 }
 0x725   :  { %v2477_v6 = vadd.f32 %v800_v5, %v792_v4 }
 0x727   :  { %1977 = vtanh.f32 %v2477_v6 }
 0x731   :  { %v1978_v10 = vpop.eup %1977 }
 0x732   :  { %805 = vrot.lane.b32.xlu0 %v1978_v10, %s2138_s3 }
 0x73c   :  { %v888_v57 = vpop.permute.xlu1 %887 }
 0x73d   :  { %v890_v18 = vmul.f32 %v888_v57, %v884_v12 }
 0x73f   :  { %v891_v21 = vpack.c.bf16 %v890_v18, %v890_v18 }
 0x741   :  { %1870 = vmatmul.mubr.msk.bf16.vlgmr.msra.gmra.mrb[12].mxu0 %vm426_vm3, %v891_v21 }
 0x742   :  { %1054 = vmatpush1.bf16.msra.mxu0 %v2328_v37  ;;  %1085 = vmatprep.mubr.bf16.mxu0 %v2135_v0 }
 0x743   :  { %1055 = vmatprep.subr.bf16.mxu0 %v2330_v38 }
 0x746   :  { %1056 = vmatpush1.bf16.msra.mxu0 %v2335_v39 }
 0x747   :  { %1057 = vmatprep.subr.bf16.mxu0 %v2338_v40 }
 0x74a   :  { %1058 = vmatpush1.bf16.msra.mxu0 %v2341_v41 }
 0x74b   :  { %1059 = vmatprep.subr.bf16.mxu0 %v2344_v42 }
 0x74e   :  { %1060 = vmatpush1.bf16.msra.mxu0 %v2347_v43 }
 0x74f   :  { %1061 = vmatprep.subr.bf16.mxu0 %v2350_v44 }
 0x752   :  { %1062 = vmatpush1.bf16.msra.mxu0 %v2353_v45 }
 0x753   :  { %1063 = vmatprep.subr.bf16.mxu0 %v2356_v46 }
 0x756   :  { %1064 = vmatpush1.bf16.msra.mxu0 %v2359_v47 }
 0x757   :  { %1065 = vmatprep.subr.bf16.mxu0 %v2362_v48 }
 0x75a   :  { %1066 = vmatpush1.bf16.msra.mxu0 %v2365_v49 }
 0x75b   :  { %1067 = vmatprep.subr.bf16.mxu0 %v2369_v51 }
 0x75e   :  { %1068 = vmatpush1.bf16.msra.mxu0 %v2371_v53 }
 0x75f   :  { %1276 = vmatprep.subr.bf16.mxu0 %v2230_v7 }
 0x7a4   :  { %v806_v23 = vpop.permute.xlu0 %805 }
 0x7a5   :  { %v808_v24 = vmul.f32 %v806_v23, %v791_v22 }
 0x7a7   :  { %v809_v26 = vpack.c.bf16 %v808_v24, %v808_v24 }
 0x7a9   :  { %893 = vrot.lane.b32.xlu0 %v809_v26, %s2138_s3 }
 0x814   :  { %v1002_v27 = vpop.f32.mrb[12].mxu0 }
 0x815   :  { %v1004_v28 = vpop.f32.mrb[13].mxu0 }
 0x816   :  { %v1011_v29 = vcombine.low %v1002_v27, %v1004_v28  ;;  %v1006_v30 = vpop.f32.mrb[14].mxu0 }
 0x817   :  { %v1007_v31 = vpop.f32.mrb[15].mxu0 }
 0x818   :  { %v1018_v32 = vrot.slane %v1011_v29, %v2305_v16 }
 0x81a   :  { %v1020_v35 = vadd.f32 %v1018_v32, %v965_v33 }
 0x81b   :  { %v894_v50 = vpop.permute.xlu0 %893 }
 0x81c   :  { %1979 = vtanh.f32 %v1020_v35  ;;  %v897_v19 = vsel %vm426_vm3, %v891_v21, %v894_v50 }
 0x81d   :  { %932 = vmatmul.mubr.bf16.vlgmr.msra.gmra.mrb[16].mxu1 %v897_v19 }
 0x81e   :  { %1123 = vmatpush1.bf16.msra.mxu1 %v2232_v8  ;;  %1154 = vmatprep.mubr.bf16.mxu1 %v2135_v0 }
 0x81f   :  { %1124 = vmatprep.subr.bf16.mxu1 %v2234_v9 }
 0x822   :  { %1125 = vmatpush1.bf16.msra.mxu1 %v2239_v11 }
 0x823   :  { %1126 = vmatprep.subr.bf16.mxu1 %v2244_v13 }
 0x826   :  { %v1980_v34 = vpop.eup %1979  ;;  %1127 = vmatpush1.bf16.msra.mxu1 %v2247_v14 }
 0x827   :  { %1026 = vrot.lane.b32.xlu0 %v1980_v34, %s2138_s3  ;;  %1128 = vmatprep.subr.bf16.mxu1 %v2250_v15  ;;  %v1022_v20 = vmul.f32 0.5, %v1980_v34 }
 0x829   :  { %v1023_v56 = vadd.f32 0.5, %v1022_v20 }
 0x82a   :  { %1129 = vmatpush1.bf16.msra.mxu1 %v2255_v17 }
 0x82b   :  { %1207 = vmatprep.subr.bf16.mxu1 %v2326_v36  ;;  %v1024_v4 = vmul.f32 %v1023_v56, %v2472_v3  ;;  %v1038_v24 = vrot.slane %v1023_v56, 2 }
 0x899   :  { %v1027_v55 = vpop.permute.xlu0 %1026 }
 0x89a   :  { %v1028_v58 = vrot.slane %v1027_v55, 2 }
 0x89c   :  { %v1030_v59 = vmul.f32 %v1028_v58, %v1023_v56  ;;  %v1119_v58 = vld [vmem:[#allocation2 + $0x10] sm:$0xf] }
 0x89e   :  { %1032 = vrot.lane.b32.xlu0 %v1030_v59, %s2138_s3 }
 0x8f0   :  { %v933_v60 = vpop.f32.mrb[16].mxu1 }
 0x8f1   :  { %v935_v62 = vpop.f32.mrb[17].mxu1  ;;  %v934_v57 = vadd.f32 %v933_v60, %v2421_v25 }
 0x8f2   :  { %v936_v63 = vadd.f32 %v935_v62, %v2413_v61  ;;  %v937_v1 = vpop.f32.mrb[18].mxu1 }
 0x8f3   :  { %v938_v2 = vpop.f32.mrb[19].mxu1 }
 0x8f4   :  { %1981 = vtanh.f32 %v936_v63 }
 0x8fe   :  { %v1982_v54 = vpop.eup %1981 }
 0x8ff   :  { %948 = vrot.lane.b32.xlu1 %v1982_v54, %s2138_s3  ;;  %v943_v32 = vmul.f32 0.5, %v1982_v54 }
 0x901   :  { %v945_v33 = vadd.f32 0.5, %v943_v32 }
 0x910   :  { %v1033_v5 = vpop.permute.xlu0 %1032 }
 0x911   :  { %v2516_v10 = vadd.f32 %v1033_v5, %v1024_v4 }
 0x913   :  { %1983 = vtanh.f32 %v2516_v10 }
 0x914   :  { %1985 = vtanh.f32 %v934_v57 }
 0x91d   :  { %v1984_v12 = vpop.eup %1983 }
 0x91e   :  { %1041 = vrot.lane.b32.xlu0 %v1984_v12, %s2138_s3  ;;  %v1986_v18 = vpop.eup %1985 }
 0x91f   :  { %v942_v21 = vmul.f32 0.5, %v1986_v18 }
 0x921   :  { %v944_v52 = vadd.f32 0.5, %v942_v21 }
 0x923   :  { %v946_v28 = vmul.f32 %v944_v52, %v2477_v6 }
 0x971   :  { %v949_v22 = vpop.permute.xlu1 %948 }
 0x972   :  { %v951_v23 = vmul.f32 %v949_v22, %v944_v52 }
 0x974   :  { %953 = vrot.lane.b32.xlu1 %v951_v23, %s2138_s3  ;;  %v2035_v23 = vld [vmem:[#allocation3 + $0x4] ss:$8 sps:$4 sm:$0xff]  }
 0x990   :  { %v1042_v3 = vpop.permute.xlu0 %1041 }
 0x991   :  { %v1044_v26 = vmul.f32 %v1042_v3, %v1038_v24 }
 0x993   :  { %v1045_v27 = vpack.c.bf16 %v1044_v26, %v1044_v26 }
 0x995   :  { %1871 = vmatmul.mubr.msk.bf16.vlgmr.msra.gmra.mrb[20].mxu1 %vm426_vm3, %v1045_v27 }
 0x996   :  { %1208 = vmatpush1.bf16.msra.mxu1 %v2328_v37  ;;  %1239 = vmatprep.mubr.bf16.mxu1 %v2135_v0 }
 0x997   :  { %1209 = vmatprep.subr.bf16.mxu1 %v2330_v38 }
 0x99a   :  { %1210 = vmatpush1.bf16.msra.mxu1 %v2335_v39 }
 0x99b   :  { %1211 = vmatprep.subr.bf16.mxu1 %v2338_v40 }
 0x99e   :  { %1212 = vmatpush1.bf16.msra.mxu1 %v2341_v41 }
 0x99f   :  { %1213 = vmatprep.subr.bf16.mxu1 %v2344_v42 }
 0x9a2   :  { %1214 = vmatpush1.bf16.msra.mxu1 %v2347_v43 }
 0x9a3   :  { %1215 = vmatprep.subr.bf16.mxu1 %v2350_v44 }
 0x9a6   :  { %1216 = vmatpush1.bf16.msra.mxu1 %v2353_v45 }
 0x9a7   :  { %1217 = vmatprep.subr.bf16.mxu1 %v2356_v46 }
 0x9aa   :  { %1218 = vmatpush1.bf16.msra.mxu1 %v2359_v47 }
 0x9ab   :  { %1219 = vmatprep.subr.bf16.mxu1 %v2362_v48 }
 0x9ae   :  { %1220 = vmatpush1.bf16.msra.mxu1 %v2365_v49 }
 0x9af   :  { %1221 = vmatprep.subr.bf16.mxu1 %v2369_v51 }
 0x9b2   :  { %1222 = vmatpush1.bf16.msra.mxu1 %v2371_v53 }
 0x9b3   :  { %1430 = vmatprep.subr.bf16.mxu1 %v2230_v7 }
 0x9e6   :  { %v954_v29 = vpop.permute.xlu1 %953 }
 0x9e7   :  { %v2541_v30 = vadd.f32 %v954_v29, %v946_v28 }
 0x9e9   :  { %1987 = vtanh.f32 %v2541_v30 }
 0x9f3   :  { %v1988_v31 = vpop.eup %1987 }
 0x9f4   :  { %959 = vrot.lane.b32.xlu1 %v1988_v31, %s2138_s3 }
 0xa66   :  { %v960_v35 = vpop.permute.xlu1 %959 }
 0xa67   :  { %v962_v50 = vmul.f32 %v960_v35, %v945_v33 }
 0xa68   :  { %v1156_v19 = vpop.f32.mrb[20].mxu1 }
 0xa69   :  { %v963_v34 = vpack.c.bf16 %v962_v50, %v962_v50  ;;  %v1158_v20 = vpop.f32.mrb[21].mxu1 }
 0xa6a   :  { %v1165_v55 = vcombine.low %v1156_v19, %v1158_v20  ;;  %v1160_v56 = vpop.f32.mrb[22].mxu1 }
 0xa6b   :  { %1047 = vrot.lane.b32.xlu1 %v963_v34, %s2138_s3  ;;  %v1161_v7 = vpop.f32.mrb[23].mxu1 }
 0xa6c   :  { %v1172_v6 = vrot.slane %v1165_v55, %v2305_v16  ;;  %v1273_v7 = vld [vmem:[#allocation2 + $0x14] sm:$0xf] }
 0xa6e   :  { %v1174_v59 = vadd.f32 %v1172_v6, %v1119_v58 }
 0xa70   :  { %1989 = vtanh.f32 %v1174_v59 }
 0xa7a   :  { %v1990_v60 = vpop.eup %1989 }
 0xa7b   :  { %1180 = vrot.lane.b32.xlu1 %v1990_v60, %s2138_s3  ;;  %v1176_v1 = vmul.f32 0.5, %v1990_v60 }
 0xa7d   :  { %v1177_v54 = vadd.f32 0.5, %v1176_v1 }
 0xa7f   :  { %v1192_v21 = vrot.slane %v1177_v54, 2 }
 0xadd   :  { %v1048_v62 = vpop.permute.xlu1 %1047 }
 0xade   :  { %v1051_v63 = vsel %vm426_vm3, %v1045_v27, %v1048_v62 }
 0xadf   :  { %1086 = vmatmul.mubr.bf16.vlgmr.msra.gmra.mrb[16].mxu0 %v1051_v63 }
 0xae0   :  { %1277 = vmatpush1.bf16.msra.mxu0 %v2232_v8  ;;  %1308 = vmatprep.mubr.bf16.mxu0 %v2135_v0 }
 0xae1   :  { %1278 = vmatprep.subr.bf16.mxu0 %v2234_v9  ;;  %v1178_v9 = vmul.f32 %v1177_v54, %v2516_v10 }
 0xae4   :  { %1279 = vmatpush1.bf16.msra.mxu0 %v2239_v11 }
 0xae5   :  { %1280 = vmatprep.subr.bf16.mxu0 %v2244_v13 }
 0xae8   :  { %1281 = vmatpush1.bf16.msra.mxu0 %v2247_v14 }
 0xae9   :  { %1282 = vmatprep.subr.bf16.mxu0 %v2250_v15 }
 0xaec   :  { %1283 = vmatpush1.bf16.msra.mxu0 %v2255_v17 }
 0xaed   :  { %v1181_v2 = vpop.permute.xlu1 %1180  ;;  %1361 = vmatprep.subr.bf16.mxu0 %v2326_v36 }
 0xaee   :  { %v1182_v8 = vrot.slane %v1181_v2, 2 }
 0xaf0   :  { %v1184_v4 = vmul.f32 %v1182_v8, %v1177_v54  ;;  %v2594_v8 = vld [vmem:[#allocation3] ss:$8 sps:$4 sm:$0xff]  }
 0xaf2   :  { %1186 = vrot.lane.b32.xlu1 %v1184_v4, %s2138_s3 }
 0xb64   :  { %v1187_v11 = vpop.permute.xlu1 %1186 }
 0xb65   :  { %v2560_v5 = vadd.f32 %v1187_v11, %v1178_v9  ;;  %v2598_v9 = vld [vmem:[#allocation3 + $0x14] ss:$8 sps:$4 sm:$0xff]  }
 0xb67   :  { %1991 = vtanh.f32 %v2560_v5 }
 0xb71   :  { %v1992_v13 = vpop.eup %1991 }
 0xb72   :  { %1195 = vrot.lane.b32.xlu1 %v1992_v13, %s2138_s3 }
 0xbb2   :  { %v1087_v14 = vpop.f32.mrb[16].mxu0 }
 0xbb3   :  { %v1089_v15 = vpop.f32.mrb[17].mxu0  ;;  %v1088_v24 = vadd.f32 %v1087_v14, %v2421_v25 }
 0xbb4   :  { %v1090_v17 = vadd.f32 %v1089_v15, %v2413_v61  ;;  %v1091_v12 = vpop.f32.mrb[18].mxu0  ;;  %v2601_v15 = vld [vmem:[#allocation3 + $0x10] ss:$8 sps:$4 sm:$0xff]  }
 0xbb5   :  { %v1092_v57 = vpop.f32.mrb[19].mxu0  ;;  %v2608_v12 = vld [vmem:[#allocation3 + $0x20] ss:$8 sps:$4 sm:$0xff]  }
 0xbb6   :  { %1993 = vtanh.f32 %v1090_v17  ;;  %v2604_v17 = vld [vmem:[#allocation3 + $0x24] ss:$8 sps:$4 sm:$0xff]   ;;  %v2611_v57 = vld [vmem:[#allocation3 + $0x34] ss:$8 sps:$4 sm:$0xff]  }
 0xbb7   :  { %1995 = vtanh.f32 %v1088_v24 }
 0xbc0   :  { %v1994_v18 = vpop.eup %1993 }
 0xbc1   :  { %1102 = vrot.lane.b32.xlu0 %v1994_v18, %s2138_s3  ;;  %v1996_v3 = vpop.eup %1995  ;;  %v1097_v58 = vmul.f32 0.5, %v1994_v18  ;;  %v2614_v18 = vld [vmem:[#allocation3 + $0x30] ss:$8 sps:$4 sm:$0xff]  }
 0xbc2   :  { %v1096_v26 = vmul.f32 0.5, %v1996_v3 }
 0xbc4   :  { %v1098_v27 = vadd.f32 0.5, %v1096_v26 }
 0xbc6   :  { %v1100_v31 = vmul.f32 %v1098_v27, %v2541_v30  ;;  %v1099_v30 = vadd.f32 0.5, %v1097_v58 }
 0xbe4   :  { %v1196_v10 = vpop.permute.xlu1 %1195 }
 0xbe5   :  { %v1198_v52 = vmul.f32 %v1196_v10, %v1192_v21 }
 0xbe7   :  { %v1199_v22 = vpack.c.bf16 %v1198_v52, %v1198_v52 }
 0xbe9   :  { %1872 = vmatmul.mubr.msk.bf16.vlgmr.msra.gmra.mrb[20].mxu0 %vm426_vm3, %v1199_v22 }
 0xbea   :  { %1362 = vmatpush1.bf16.msra.mxu0 %v2328_v37  ;;  %1393 = vmatprep.mubr.bf16.mxu0 %v2135_v0 }
 0xbeb   :  { %1363 = vmatprep.subr.bf16.mxu0 %v2330_v38 }
 0xbee   :  { %1364 = vmatpush1.bf16.msra.mxu0 %v2335_v39 }
 0xbef   :  { %1365 = vmatprep.subr.bf16.mxu0 %v2338_v40 }
 0xbf2   :  { %1366 = vmatpush1.bf16.msra.mxu0 %v2341_v41 }
 0xbf3   :  { %1367 = vmatprep.subr.bf16.mxu0 %v2344_v42 }
 0xbf6   :  { %1368 = vmatpush1.bf16.msra.mxu0 %v2347_v43 }
 0xbf7   :  { %1369 = vmatprep.subr.bf16.mxu0 %v2350_v44 }
 0xbfa   :  { %1370 = vmatpush1.bf16.msra.mxu0 %v2353_v45 }
 0xbfb   :  { %1371 = vmatprep.subr.bf16.mxu0 %v2356_v46 }
 0xbfe   :  { %1372 = vmatpush1.bf16.msra.mxu0 %v2359_v47 }
 0xbff   :  { %1373 = vmatprep.subr.bf16.mxu0 %v2362_v48 }
 0xc02   :  { %1374 = vmatpush1.bf16.msra.mxu0 %v2365_v49 }
 0xc03   :  { %1375 = vmatprep.subr.bf16.mxu0 %v2369_v51 }
 0xc06   :  { %1376 = vmatpush1.bf16.msra.mxu0 %v2371_v53 }
 0xc07   :  { %1584 = vmatprep.subr.bf16.mxu0 %v2035_v23 }
 0xc33   :  { %v1103_v28 = vpop.permute.xlu0 %1102 }
 0xc34   :  { %v1105_v29 = vmul.f32 %v1103_v28, %v1098_v27 }
 0xc36   :  { %1107 = vrot.lane.b32.xlu0 %v1105_v29, %s2138_s3 }
 0xca8   :  { %v1108_v32 = vpop.permute.xlu0 %1107 }
 0xca9   :  { %v2586_v33 = vadd.f32 %v1108_v32, %v1100_v31 }
 0xcab   :  { %1997 = vtanh.f32 %v2586_v33 }
 0xcb5   :  { %v1998_v35 = vpop.eup %1997 }
 0xcb6   :  { %1113 = vrot.lane.b32.xlu0 %v1998_v35, %s2138_s3  ;;  %v1427_v35 = vld [vmem:[#allocation2 + $0x18] sm:$0xf] }
 0xcbc   :  { %v1310_v50 = vpop.f32.mrb[20].mxu0 }
 0xcbd   :  { %v1312_v19 = vpop.f32.mrb[21].mxu0 }
 0xcbe   :  { %v1319_v34 = vcombine.low %v1310_v50, %v1312_v19  ;;  %v1314_v20 = vpop.f32.mrb[22].mxu0 }
 0xcbf   :  { %v1315_v55 = vpop.f32.mrb[23].mxu0 }
 0xcc0   :  { %v1326_v56 = vrot.slane %v1319_v34, %v2305_v16 }
 0xcc2   :  { %v1328_v6 = vadd.f32 %v1326_v56, %v1273_v7 }
 0xcc4   :  { %1999 = vtanh.f32 %v1328_v6 }
 0xcce   :  { %v2000_v63 = vpop.eup %1999 }
 0xccf   :  { %v1330_v54 = vmul.f32 0.5, %v2000_v63 }
 0xcd1   :  { %v1331_v11 = vadd.f32 0.5, %v1330_v54 }
 0xcd3   :  { %v1332_v21 = vmul.f32 %v1331_v11, %v2560_v5 }
 0xd28   :  { %v1114_v59 = vpop.permute.xlu0 %1113 }
 0xd29   :  { %v1116_v60 = vmul.f32 %v1114_v59, %v1099_v30 }
 0xd2b   :  { %v1117_v62 = vpack.c.bf16 %v1116_v60, %v1116_v60 }
 0xd2d   :  { %1201 = vrot.lane.b32.xlu0 %v1117_v62, %s2138_s3 }
 0xd31   :  { %1334 = vrot.lane.b32.xlu0 %v2000_v63, %s2138_s3  ;;  %v2043_v63 = vld [vmem:[#allocation6 + $0x4] ss:$8 sps:$4 sm:$0xff]  }
 0xd9f   :  { %v1202_v1 = vpop.permute.xlu0 %1201 }
 0xda0   :  { %v1205_v2 = vsel %vm426_vm3, %v1199_v22, %v1202_v1 }
 0xda1   :  { %1240 = vmatmul.mubr.bf16.vlgmr.msra.gmra.mrb[24].mxu1 %v1205_v2 }
 0xda2   :  { %1431 = vmatpush1.bf16.msra.mxu1 %v2594_v8  ;;  %1462 = vmatprep.mubr.bf16.mxu1 %v2135_v0 }
 0xda3   :  { %v1335_v4 = vpop.permute.xlu0 %1334  ;;  %1432 = vmatprep.subr.bf16.mxu1 %v2598_v9 }
 0xda4   :  { %v1336_v13 = vrot.slane %v1335_v4, 2 }
 0xda6   :  { %v1338_v14 = vmul.f32 %v1336_v13, %v1331_v11  ;;  %1433 = vmatpush1.bf16.msra.mxu1 %v2601_v15 }
 0xda7   :  { %1434 = vmatprep.subr.bf16.mxu1 %v2604_v17 }
 0xda8   :  { %1340 = vrot.lane.b32.xlu0 %v1338_v14, %s2138_s3 }
 0xdaa   :  { %1435 = vmatpush1.bf16.msra.mxu1 %v2608_v12 }
 0xdab   :  { %1436 = vmatprep.subr.bf16.mxu1 %v2611_v57 }
 0xdae   :  { %1437 = vmatpush1.bf16.msra.mxu1 %v2614_v18 }
 0xdaf   :  { %1515 = vmatprep.subr.bf16.mxu1 %v2326_v36  ;;  %v1346_v36 = vrot.slane %v1331_v11, 2 }
 0xe1a   :  { %v1341_v10 = vpop.permute.xlu0 %1340 }
 0xe1b   :  { %v2619_v52 = vadd.f32 %v1341_v10, %v1332_v21  ;;  %v2044_v21 = vld [vmem:[#allocation6] ss:$8 sps:$4 sm:$0xff]   ;;  %v2045_v10 = vld [vmem:[#allocation6 + $0x14] ss:$8 sps:$4 sm:$0xff]  }
 0xe1d   :  { %2001 = vtanh.f32 %v2619_v52 }
 0xe27   :  { %v2002_v22 = vpop.eup %2001 }
 0xe28   :  { %1349 = vrot.lane.b32.xlu0 %v2002_v22, %s2138_s3  ;;  %v2047_v22 = vld [vmem:[#allocation6 + $0x24] ss:$8 sps:$4 sm:$0xff]  }
 0xe74   :  { %v1241_v23 = vpop.f32.mrb[24].mxu1 }
 0xe75   :  { %v1243_v24 = vpop.f32.mrb[25].mxu1 }
 0xe76   :  { %v1244_v3 = vadd.f32 %v1243_v24, %v2413_v61  ;;  %v1245_v26 = vpop.f32.mrb[26].mxu1  ;;  %v2049_v24 = vld [vmem:[#allocation6 + $0x34] ss:$8 sps:$4 sm:$0xff]  }
 0xe77   :  { %v1246_v27 = vpop.f32.mrb[27].mxu1  ;;  %v2051_v26 = vld [vmem:[#allocation6 + $0x44] ss:$8 sps:$4 sm:$0xff]  }
 0xe78   :  { %2003 = vtanh.f32 %v1244_v3  ;;  %v2050_v3 = vld [vmem:[#allocation6 + $0x30] ss:$8 sps:$4 sm:$0xff]   ;;  %v2052_v27 = vld [vmem:[#allocation6 + $0x40] ss:$8 sps:$4 sm:$0xff]  }
 0xe82   :  { %v2004_v28 = vpop.eup %2003 }
 0xe83   :  { %1256 = vrot.lane.b32.xlu1 %v2004_v28, %s2138_s3  ;;  %v1251_v19 = vmul.f32 0.5, %v2004_v28  ;;  %v2053_v28 = vld [vmem:[#allocation6 + $0x54] ss:$8 sps:$4 sm:$0xff]  }
 0xe9a   :  { %v1350_v5 = vpop.permute.xlu0 %1349 }
 0xe9b   :  { %v1352_v29 = vmul.f32 %v1350_v5, %v1346_v36  ;;  %v2054_v36 = vld [vmem:[#allocation6 + $0x50] ss:$8 sps:$4 sm:$0xff]   ;;  %v2056_v5 = vld [vmem:[#allocation6 + $0x60] ss:$8 sps:$4 sm:$0xff]  }
 0xe9d   :  { %v1353_v31 = vpack.c.bf16 %v1352_v29, %v1352_v29  ;;  %v2057_v29 = vld [vmem:[#allocation6 + $0x74] ss:$8 sps:$4 sm:$0xff]  }
 0xe9f   :  { %1873 = vmatmul.mubr.msk.bf16.vlgmr.msra.gmra.mrb[28].mxu1 %vm426_vm3, %v1353_v31 }
 0xea0   :  { %1516 = vmatpush1.bf16.msra.mxu1 %v2328_v37  ;;  %1547 = vmatprep.mubr.bf16.mxu1 %v2135_v0  ;;  %v1242_v37 = vadd.f32 %v1241_v23, %v2421_v25  ;;  %v2048_v23 = vld [vmem:[#allocation6 + $0x20] ss:$8 sps:$4 sm:$0xff]  }
 0xea1   :  { %1517 = vmatprep.subr.bf16.mxu1 %v2330_v38 }
 0xea2   :  { %2005 = vtanh.f32 %v1242_v37 }
 0xea4   :  { %1518 = vmatpush1.bf16.msra.mxu1 %v2335_v39 }
 0xea5   :  { %1519 = vmatprep.subr.bf16.mxu1 %v2338_v40 }
 0xea8   :  { %1520 = vmatpush1.bf16.msra.mxu1 %v2341_v41 }
 0xea9   :  { %1521 = vmatprep.subr.bf16.mxu1 %v2344_v42 }
 0xeac   :  { %1522 = vmatpush1.bf16.msra.mxu1 %v2347_v43  ;;  %v2006_v38 = vpop.eup %2005 }
 0xead   :  { %1523 = vmatprep.subr.bf16.mxu1 %v2350_v44  ;;  %v1250_v39 = vmul.f32 0.5, %v2006_v38 }
 0xeaf   :  { %v1252_v40 = vadd.f32 0.5, %v1250_v39 }
 0xeb0   :  { %1524 = vmatpush1.bf16.msra.mxu1 %v2353_v45 }
 0xeb1   :  { %1525 = vmatprep.subr.bf16.mxu1 %v2356_v46  ;;  %v1254_v43 = vmul.f32 %v1252_v40, %v2586_v33  ;;  %v1253_v33 = vadd.f32 0.5, %v1251_v19 }
 0xeb4   :  { %1526 = vmatpush1.bf16.msra.mxu1 %v2359_v47 }
 0xeb5   :  { %1527 = vmatprep.subr.bf16.mxu1 %v2362_v48 }
 0xeb8   :  { %1528 = vmatpush1.bf16.msra.mxu1 %v2365_v49 }
 0xeb9   :  { %1529 = vmatprep.subr.bf16.mxu1 %v2369_v51 }
 0xebc   :  { %1530 = vmatpush1.bf16.msra.mxu1 %v2371_v53 }
 0xef5   :  { %v1257_v41 = vpop.permute.xlu1 %1256 }
 0xef6   :  { %v1259_v42 = vmul.f32 %v1257_v41, %v1252_v40 }
 0xef8   :  { %1261 = vrot.lane.b32.xlu1 %v1259_v42, %s2138_s3 }
 0xf6a   :  { %v1262_v44 = vpop.permute.xlu1 %1261 }
 0xf6b   :  { %v2645_v45 = vadd.f32 %v1262_v44, %v1254_v43 }
 0xf6d   :  { %2007 = vtanh.f32 %v2645_v45 }
 0xf72   :  { %v1464_v46 = vpop.f32.mrb[28].mxu1 }
 0xf73   :  { %v1466_v47 = vpop.f32.mrb[29].mxu1 }
 0xf74   :  { %v1473_v48 = vcombine.low %v1464_v46, %v1466_v47  ;;  %v1468_v49 = vpop.f32.mrb[30].mxu1 }
 0xf75   :  { %v1469_v51 = vpop.f32.mrb[31].mxu1 }
 0xf76   :  { %v1480_v32 = vrot.slane %v1473_v48, %v2305_v16 }
 0xf77   :  { %v2008_v53 = vpop.eup %2007 }
 0xf78   :  { %1267 = vrot.lane.b32.xlu1 %v2008_v53, %s2138_s3  ;;  %v1482_v50 = vadd.f32 %v1480_v32, %v1427_v35 }
 0xf7a   :  { %2009 = vtanh.f32 %v1482_v50  ;;  %v1581_v50 = vld [vmem:[#allocation2 + $0x1c] sm:$0xf] }
 0xf84   :  { %v2010_v56 = vpop.eup %2009 }
 0xf85   :  { %v1484_v58 = vmul.f32 0.5, %v2010_v56 }
 0xf87   :  { %v1485_v59 = vadd.f32 0.5, %v1484_v58 }
 0xf89   :  { %v1486_v1 = vmul.f32 %v1485_v59, %v2619_v52  ;;  %v2046_v52 = vld [vmem:[#allocation6 + $0x10] ss:$8 sps:$4 sm:$0xff]  }
 0xfea   :  { %v1268_v34 = vpop.permute.xlu1 %1267 }
 0xfeb   :  { %v1270_v20 = vmul.f32 %v1268_v34, %v1253_v33 }
 0xfed   :  { %v1271_v55 = vpack.c.bf16 %v1270_v20, %v1270_v20 }
 0xfef   :  { %1355 = vrot.lane.b32.xlu1 %v1271_v55, %s2138_s3 }
 0xff3   :  { %1488 = vrot.lane.b32.xlu1 %v2010_v56, %s2138_s3 }
0x1061   :  { %v1356_v7 = vpop.permute.xlu1 %1355 }
0x1062   :  { %v1359_v6 = vsel %vm426_vm3, %v1353_v31, %v1356_v7  ;;  %v2058_v31 = vld [vmem:[#allocation6 + $0x70] ss:$8 sps:$4 sm:$0xff]  }
0x1063   :  { %1394 = vmatmul.mubr.bf16.vlgmr.msra.gmra.mrb[24].mxu0 %v1359_v6 }
0x1064   :  { %1585 = vmatpush1.bf16.msra.mxu0 %v2594_v8  ;;  %1616 = vmatprep.mubr.bf16.mxu0 %v2135_v0 }
0x1065   :  { %v1489_v30 = vpop.permute.xlu1 %1488  ;;  %1586 = vmatprep.subr.bf16.mxu0 %v2598_v9 }
0x1066   :  { %v1490_v60 = vrot.slane %v1489_v30, 2 }
0x1068   :  { %v1492_v62 = vmul.f32 %v1490_v60, %v1485_v59  ;;  %1587 = vmatpush1.bf16.msra.mxu0 %v2601_v15 }
0x1069   :  { %1588 = vmatprep.subr.bf16.mxu0 %v2604_v17  ;;  %v1500_v17 = vrot.slane %v1485_v59, 2 }
0x106a   :  { %1494 = vrot.lane.b32.xlu1 %v1492_v62, %s2138_s3 }
0x106c   :  { %1589 = vmatpush1.bf16.msra.mxu0 %v2608_v12 }
0x106d   :  { %1590 = vmatprep.subr.bf16.mxu0 %v2611_v57 }
0x1070   :  { %1591 = vmatpush1.bf16.msra.mxu0 %v2614_v18 }
0x1071   :  { %1669 = vmatprep.subr.bf16.mxu0 %v2043_v63 }
0x10dc   :  { %v1495_v2 = vpop.permute.xlu1 %1494 }
0x10dd   :  { %v2663_v54 = vadd.f32 %v1495_v2, %v1486_v1 }
0x10df   :  { %2011 = vtanh.f32 %v2663_v54 }
0x10e9   :  { %v2012_v8 = vpop.eup %2011 }
0x10ea   :  { %1503 = vrot.lane.b32.xlu1 %v2012_v8, %s2138_s3 }
0x1136   :  { %v1395_v4 = vpop.f32.mrb[24].mxu0 }
0x1137   :  { %v1397_v9 = vpop.f32.mrb[25].mxu0  ;;  %v1396_v37 = vadd.f32 %v1395_v4, %v2421_v25 }
0x1138   :  { %v1398_v11 = vadd.f32 %v1397_v9, %v2413_v61  ;;  %v1399_v13 = vpop.f32.mrb[26].mxu0 }
0x1139   :  { %v1400_v14 = vpop.f32.mrb[27].mxu0 }
0x113a   :  { %2013 = vtanh.f32 %v1398_v11 }
0x113b   :  { %2015 = vtanh.f32 %v1396_v37 }
0x1144   :  { %v2014_v15 = vpop.eup %2013 }
0x1145   :  { %1410 = vrot.lane.b32.xlu0 %v2014_v15, %s2138_s3  ;;  %v2016_v38 = vpop.eup %2015  ;;  %v1405_v33 = vmul.f32 0.5, %v2014_v15 }
0x1146   :  { %v1404_v39 = vmul.f32 0.5, %v2016_v38 }
0x1147   :  { %v1407_v34 = vadd.f32 0.5, %v1405_v33 }
0x1148   :  { %v1406_v40 = vadd.f32 0.5, %v1404_v39 }
0x114a   :  { %v1408_v43 = vmul.f32 %v1406_v40, %v2645_v45 }
0x115c   :  { %v1504_v12 = vpop.permute.xlu1 %1503 }
0x115d   :  { %v1506_v57 = vmul.f32 %v1504_v12, %v1500_v17 }
0x115f   :  { %v2669_v18 = vpack.c.bf16 %v1506_v57, %v1506_v57 }
0x1161   :  { %1874 = vmatmul.mubr.msk.bf16.vlgmr.msra.gmra.mrb[28].mxu0 %vm426_vm3, %v2669_v18 }
0x1162   :  { %1670 = vmatpush1.bf16.msra.mxu0 %v2044_v21  ;;  %1701 = vmatprep.mubr.bf16.mxu0 %v2135_v0  ;;  %v2055_v0 = vld [vmem:[#allocation6 + $0x64] ss:$8 sps:$4 sm:$0xff]  }
0x1163   :  { %1671 = vmatprep.subr.bf16.mxu0 %v2045_v10 }
0x1166   :  { %1672 = vmatpush1.bf16.msra.mxu0 %v2046_v52 }
0x1167   :  { %1673 = vmatprep.subr.bf16.mxu0 %v2047_v22 }
0x116a   :  { %1674 = vmatpush1.bf16.msra.mxu0 %v2048_v23 }
0x116b   :  { %1675 = vmatprep.subr.bf16.mxu0 %v2049_v24 }
0x116e   :  { %1676 = vmatpush1.bf16.msra.mxu0 %v2050_v3 }
0x116f   :  { %1677 = vmatprep.subr.bf16.mxu0 %v2051_v26 }
0x1172   :  { %1678 = vmatpush1.bf16.msra.mxu0 %v2052_v27 }
0x1173   :  { %1679 = vmatprep.subr.bf16.mxu0 %v2053_v28 }
0x1176   :  { %1680 = vmatpush1.bf16.msra.mxu0 %v2054_v36 }
0x1177   :  { %1681 = vmatprep.subr.bf16.mxu0 %v2055_v0 }
0x117a   :  { %1682 = vmatpush1.bf16.msra.mxu0 %v2056_v5 }
0x117b   :  { %1683 = vmatprep.subr.bf16.mxu0 %v2057_v29 }
0x117e   :  { %1684 = vmatpush1.bf16.msra.mxu0 %v2058_v31 }
0x11b7   :  { %v1411_v41 = vpop.permute.xlu0 %1410 }
0x11b8   :  { %v1413_v42 = vmul.f32 %v1411_v41, %v1406_v40 }
0x11ba   :  { %1415 = vrot.lane.b32.xlu0 %v1413_v42, %s2138_s3 }
0x122c   :  { %v1416_v44 = vpop.permute.xlu0 %1415 }
0x122d   :  { %v1418_v46 = vadd.f32 %v1416_v44, %v1408_v43 }
0x122f   :  { %2017 = vtanh.f32 %v1418_v46 }
0x1234   :  { %v1618_v47 = vpop.f32.mrb[28].mxu0 }
0x1235   :  { %v1620_v48 = vpop.f32.mrb[29].mxu0 }
0x1236   :  { %v1627_v49 = vcombine.low %v1618_v47, %v1620_v48  ;;  %v1622_v51 = vpop.f32.mrb[30].mxu0 }
0x1237   :  { %v1623_v53 = vpop.f32.mrb[31].mxu0  ;;  %v2139_v51 = vmov 0.0  }
0x1238   :  { %v1634_v35 = vrot.slane %v1627_v49, %v2305_v16  ;;  %1886 = vmatprep.subr.bf16.mxu1 %v2139_v51  ;;  %v1952_v53 = vld [vmem:[%s2732_s6 + $0x8] sm:$0xff]  }
0x1239   :  { %v2018_v32 = vpop.eup %2017 }
0x123a   :  { %1421 = vrot.lane.b32.xlu0 %v2018_v32, %s2138_s3  ;;  %v1636_v19 = vadd.f32 %v1634_v35, %v1581_v50 }
0x123c   :  { %2019 = vtanh.f32 %v1636_v19  ;;  %v1954_v19 = vld [vmem:[%s2732_s6 + $0x18] sm:$0xff]  }
0x1246   :  { %v2020_v56 = vpop.eup %2019 }
0x1247   :  { %v1638_v58 = vmul.f32 0.5, %v2020_v56 }
0x1249   :  { %v1639_v30 = vadd.f32 0.5, %v1638_v58 }
0x124b   :  { %v1640_v62 = vmul.f32 %v1639_v30, %v2663_v54  ;;  %v1654_v36 = vrot.slane %v1639_v30, 2 }
0x12ac   :  { %v1422_v20 = vpop.permute.xlu0 %1421 }
0x12ad   :  { %v1424_v45 = vmul.f32 %v1422_v20, %v1407_v34 }
0x12af   :  { %v1425_v55 = vpack.c.bf16 %v1424_v45, %v1424_v45 }
0x12b1   :  { %1509 = vrot.lane.b32.xlu0 %v1425_v55, %s2138_s3 }
0x12b5   :  { %1642 = vrot.lane.b32.xlu0 %v2020_v56, %s2138_s3 }
0x1323   :  { %v1510_v7 = vpop.permute.xlu0 %1509 }
0x1324   :  { %v1513_v6 = vsel %vm426_vm3, %v2669_v18, %v1510_v7  ;;  %v1875_v7 = vld [vmem:[%s2733_s7] ss:$0 sm:$0xff] }
0x1325   :  { %1548 = vmatmul.mubr.bf16.vlgmr.msra.gmra.mrb[32].mxu1 %v1513_v6 }
0x1326   :  { %1894 = vmatprep.mubr.msk.bf16.mxu1 %vm2140_vm4, %v2139_v51 }
0x1327   :  { %v1643_v16 = vpop.permute.xlu0 %1642 }
0x1328   :  { %v1644_v59 = vrot.slane %v1643_v16, 2 }
0x132a   :  { %v1646_v60 = vmul.f32 %v1644_v59, %v1639_v30 }
0x132c   :  { %1648 = vrot.lane.b32.xlu0 %v1646_v60, %s2138_s3 }
0x139e   :  { %v1649_v63 = vpop.permute.xlu0 %1648 }
0x139f   :  { %v1651_v1 = vadd.f32 %v1649_v63, %v1640_v62 }
0x13a1   :  { %2021 = vtanh.f32 %v1651_v1 }
0x13ab   :  { %v2022_v2 = vpop.eup %2021 }
0x13ac   :  { %1657 = vrot.lane.b32.xlu0 %v2022_v2, %s2138_s3 }
0x13f8   :  { %v1549_v8 = vpop.f32.mrb[32].mxu1 }
0x13f9   :  { %v1551_v4 = vpop.f32.mrb[33].mxu1  ;;  %v1550_v15 = vadd.f32 %v1549_v8, %v2421_v25 }
0x13fa   :  { %v1552_v9 = vadd.f32 %v1551_v4, %v2413_v61  ;;  %v1553_v11 = vpop.f32.mrb[34].mxu1 }
0x13fb   :  { %v1554_v13 = vpop.f32.mrb[35].mxu1 }
0x13fc   :  { %2023 = vtanh.f32 %v1552_v9 }
0x13fd   :  { %2025 = vtanh.f32 %v1550_v15 }
0x1406   :  { %v2024_v14 = vpop.eup %2023 }
0x1407   :  { %1564 = vrot.lane.b32.xlu1 %v2024_v14, %s2138_s3  ;;  %v2026_v54 = vpop.eup %2025  ;;  %v1559_v23 = vmul.f32 0.5, %v2024_v14 }
0x1408   :  { %v1558_v17 = vmul.f32 0.5, %v2026_v54 }
0x1409   :  { %v1561_v24 = vadd.f32 0.5, %v1559_v23 }
0x140a   :  { %v1560_v12 = vadd.f32 0.5, %v1558_v17 }
0x140c   :  { %v1562_v21 = vmul.f32 %v1560_v12, %v1418_v46 }
0x141e   :  { %v1658_v28 = vpop.permute.xlu0 %1657 }
0x141f   :  { %v1660_v0 = vmul.f32 %v1658_v28, %v1654_v36 }
0x1421   :  { %v1661_v5 = vpack.c.bf16 %v1660_v0, %v1660_v0 }
0x1479   :  { %v1565_v57 = vpop.permute.xlu1 %1564 }
0x147a   :  { %v1567_v18 = vmul.f32 %v1565_v57, %v1560_v12 }
0x147c   :  { %1569 = vrot.lane.b32.xlu1 %v1567_v18, %s2138_s3 }
0x14ee   :  { %v1570_v10 = vpop.permute.xlu1 %1569 }
0x14ef   :  { %v1572_v52 = vadd.f32 %v1570_v10, %v1562_v21 }
0x14f1   :  { %2027 = vtanh.f32 %v1572_v52 }
0x14fb   :  { %v2028_v22 = vpop.eup %2027 }
0x14fc   :  { %1575 = vrot.lane.b32.xlu1 %v2028_v22, %s2138_s3 }
0x156e   :  { %v1576_v3 = vpop.permute.xlu1 %1575 }
0x156f   :  { %v1578_v26 = vmul.f32 %v1576_v3, %v1561_v24 }
0x1571   :  { %v1579_v27 = vpack.c.bf16 %v1578_v26, %v1578_v26 }
0x1573   :  { %1663 = vrot.lane.b32.xlu1 %v1579_v27, %s2138_s3 }
0x15e5   :  { %v1664_v29 = vpop.permute.xlu1 %1663 }
0x15e6   :  { %v1667_v31 = vsel %vm426_vm3, %v1661_v5, %v1664_v29 }
0x15e7   :  { %1702 = vmatmul.mubr.bf16.vlgmr.msra.gmra.mrb[32].mxu0 %v1667_v31 }
0x16ba   :  { %v1703_v37 = vpop.f32.mrb[32].mxu0 }
0x16bb   :  { %v1705_v38 = vpop.f32.mrb[33].mxu0  ;;  %v1704_v43 = vadd.f32 %v1703_v37, %v2421_v25  ;;  %v1953_v25 = vld [vmem:[%s2732_s6 + $0x10] sm:$0xff]  }
0x16bc   :  { %v1706_v39 = vadd.f32 %v1705_v38, %v2413_v61  ;;  %v1707_v40 = vpop.f32.mrb[34].mxu0  ;;  %v1951_v61 = vld [vmem:[%s2732_s6] sm:$0xff]   ;;  %s1824_s6 = sshll.u32 %s2141_s28, 4  ;;  %s1825_s6 = int_to_ptr.vmem [resolvable:$true] %s1824_s6 }
0x16bd   :  { %v1708_v41 = vpop.f32.mrb[35].mxu0  ;;  %1887 = vmatpush3.bf16.msra.mxu1 %v1951_v61  ;;  %s2103_s30 = scalar_lea.vmem %s1825_s6, 32  ;;  %p2108_p3 = scmp.lt.s32.totalorder %s1825_s6, %s1825_s6 }
0x16be   :  { %2029 = vtanh.f32 %v1706_v39  ;;  %1888 = vmatprep.subr.bf16.mxu1 %v2139_v51  ;;  %p2104_p2 = scmp.ne.s32.totalorder %s1825_s6, %s2103_s30  ;;  %p2109_p4 = scmp.lt.s32.totalorder %s2103_s30, %s2103_s30 }
0x16bf   :  { %2031 = vtanh.f32 %v1704_v43 }
0x16c0   :  { %p2110_p5 = por %p2109_p4, %p2108_p3 }
0x16c1   :  { %1889 = vmatpush3.bf16.msra.mxu1 %v1952_v53 }
0x16c2   :  { %1890 = vmatprep.subr.bf16.mxu1 %v2139_v51  ;;  %p2111_p6 = pnand %p2110_p5, %p2104_p2 }
0x16c5   :  { %1891 = vmatpush3.bf16.msra.mxu1 %v1953_v25 }
0x16c6   :  { %1892 = vmatprep.subr.bf16.mxu1 %v2139_v51 }
0x16c8   :  { %v2030_v42 = vpop.eup %2029 }
0x16c9   :  { %1718 = vrot.lane.b32.xlu0 %v2030_v42, %s2138_s3  ;;  %v2032_v44 = vpop.eup %2031  ;;  %1893 = vmatpush3.bf16.msra.mxu1 %v1954_v19  ;;  %v1713_v34 = vmul.f32 0.5, %v2030_v42 }
0x16ca   :  { %v1712_v46 = vmul.f32 0.5, %v2032_v44 }
0x16cb   :  { %v1715_v20 = vadd.f32 0.5, %v1713_v34 }
0x16cc   :  { %v1714_v47 = vadd.f32 0.5, %v1712_v46 }
0x16ce   :  { %v1716_v32 = vmul.f32 %v1714_v47, %v1572_v52 }
0x173b   :  { %v1719_v48 = vpop.permute.xlu0 %1718 }
0x173c   :  { %v1721_v49 = vmul.f32 %v1719_v48, %v1714_v47 }
0x173e   :  { %1723 = vrot.lane.b32.xlu1 %v1721_v49, %s2138_s3 }
0x17b0   :  { %v1724_v35 = vpop.permute.xlu1 %1723 }
0x17b1   :  { %v1726_v50 = vadd.f32 %v1724_v35, %v1716_v32 }
0x17b3   :  { %2033 = vtanh.f32 %v1726_v50 }
0x17bd   :  { %v2034_v33 = vpop.eup %2033 }
0x17be   :  { %1729 = vrot.lane.b32.xlu0 %v2034_v33, %s2138_s3 }
0x1830   :  { %v1730_v45 = vpop.permute.xlu0 %1729 }
0x1831   :  { %v1732_v55 = vmul.f32 %v1730_v45, %v1715_v20 }
0x1833   :  { %v1733_v56 = vpack.c.bf16 %v1732_v55, %v1732_v55 }
0x1835   :  { %1895 = vmatmul.mubr.msk.bf16.vlgmr.msra.gmra.mrb[36].mxu1 %vm426_vm3, %v1733_v56 }
0x1908   :  { %v1810_v6 = vpop.f32.mrb[36].mxu1 }
0x1909   :  { %v1811_v58 = vadd.f32 %v1875_v7, %v1810_v6  ;;  %v1896_v16 = vpop.f32.mrb[37].mxu1 }
0x190a   :  { %v1813_v30 = vpop.f32.mrb[38].mxu1 }
0x190b   :  { %v1897_v59 = vpop.f32.mrb[39].mxu1  ;;  %1817 = vst.msk [vmem:[#allocation8] sm:$0x3] %vm1816_vm5, %v1811_v58 }
0x190c   :  { %2114 = shalt.err (!%p2111_p6)
}
0x190d   :  { %s2115_s7 = scalar_lea.hbm %s2734_s8, 32 }
0x190e   :  { %p2116_p7 = scmp.ne.s32.totalorder %s2734_s8, %s2115_s7  ;;  %p2119_p8 = scmp.lt.u32.totalorder %s2115_s7, %s2734_s8 }
0x1910   :  { %p2121_p9 = pnand %p2119_p8, %p2116_p7 }
0x1912   :  { %2124 = shalt.err (!%p2121_p9)
}
0x1913   :  { %1827 = dma.vmem_to_hbm [thread:$0]  %s1825_s6, 32, %s2734_s8, [#allocation5]  }
0x1914   :  { %2129 = dma.done.wait [#allocation5], 32  }
0x1915   :  { %2130 = vsyncadd [#allocation5], 4294967264 }
0x1916   :  { %1831 = vsyncpa [#allocation4], 1 }
0x1917   :  { %1832 = vsyncpa [#allocation7], 1 }
0x1918   :  { %1833 = vsyncpa [#allocation5], 1 }

</bundles_post_ra>
